<compile_context>
chip_gen: v6e
topology: v6e:2x2x1
jax: 0.10.0
libtpu: 0.0.40
codegen_flags: <defaults>
</compile_context>

<pallas_src>
import math
import functools

import numpy as np
import jax
import jax.numpy as jnp
from jax.experimental import pallas as pl
from jax.experimental.pallas import tpu as pltpu


def transformer_block_kernel(
    x_ref, cos_ref, sin_ref, anw_ref, wqkv_ref, wo_ref, fnw_ref, w1_ref,
    w3_ref, w2_ref, out_ref, qkv_sc, rot_sc, o_sc,
    *, n_heads, n_kv_heads, head_dim, eps):
  n_rep = n_heads // n_kv_heads
  qd = n_heads * head_dim
  kd = n_kv_heads * head_dim
  scale = 1.0 / math.sqrt(head_dim)
  S = x_ref.shape[1]
  neg_big = float(jnp.finfo(jnp.float32).min)

  x = x_ref[0]                                              # (S, D) f32

  # ---- attention RMSNorm (f32), bf16 operands for the MXU ----
  var = jnp.mean(x * x, axis=-1, keepdims=True)
  xn = (x * jax.lax.rsqrt(var + eps) * anw_ref[...]).astype(jnp.bfloat16)

  # ---- fused QKV projection (one MXU launch), staged straight into VMEM ----
  qkv_sc[...] = jnp.dot(xn, wqkv_ref[...], preferred_element_type=jnp.float32)

  # ---- RoPE in the rotate-half layout (permutation folded into wq/wk) ----
  cos2 = cos_ref[...]                                       # (S, head_dim)
  sin2 = sin_ref[...]                                       # sign pre-folded

  def rotate_half(t):
    # roll by head_dim // 2 == swap the two halves (direction independent).
    if head_dim % 128 == 0:
      return pltpu.roll(t, shift=head_dim // 2, axis=1)     # XLU slot
    return jnp.concatenate(
        [t[:, head_dim // 2:], t[:, :head_dim // 2]], axis=1)

  def rope_head(col):                                       # static col offset
    t = qkv_sc[:, col:col + head_dim]                       # (S, hd) f32
    rot_sc[:, col:col + head_dim] = (
        t * cos2 + rotate_half(t) * sin2).astype(jnp.bfloat16)

  for h in range(n_heads):                                  # static offsets ->
    rope_head(h * head_dim)                                 # free ref slices
  for g in range(n_kv_heads):
    rope_head(qd + g * head_dim)
  rot_sc[:, qd + kd:] = qkv_sc[:, qd + kd:].astype(jnp.bfloat16)  # V: cast only

  # ---- in-kernel causal mask (no (S, S) HBM traffic) ----
  row = jax.lax.broadcasted_iota(jnp.int32, (S, S), 0)
  col = jax.lax.broadcasted_iota(jnp.int32, (S, S), 1)
  causal = col <= row

  # ---- per-head attention; o written head-major into (S, qd) bf16 scratch --
  # TODO(synk): at real S add a query-tile grid axis + online softmax.
  for h in range(n_heads):
    g = h // n_rep                                          # GQA kv-head share
    q = rot_sc[:, h * head_dim:(h + 1) * head_dim]          # (S, hd) bf16
    k = rot_sc[:, qd + g * head_dim: qd + (g + 1) * head_dim]
    v = rot_sc[:, qd + kd + g * head_dim: qd + kd + (g + 1) * head_dim]
    s = jax.lax.dot_general(q, k, (((1,), (1,)), ((), ())),
                            preferred_element_type=jnp.float32) * scale
    s = jnp.where(causal, s, neg_big)
    m = jnp.max(s, axis=-1, keepdims=True)
    e = jnp.exp(s - m)
    denom = jnp.sum(e, axis=-1, keepdims=True)
    p = (e * pl.reciprocal(denom, approx=True)).astype(jnp.bfloat16)
    o = jnp.dot(p, v, preferred_element_type=jnp.float32)   # (S, hd) f32
    o_sc[:, h * head_dim:(h + 1) * head_dim] = o.astype(jnp.bfloat16)

  # ---- single output projection: (S, qd) @ (qd, D), full contraction ----
  attn = jnp.dot(o_sc[...], wo_ref[...], preferred_element_type=jnp.float32)
  h_res = x + attn                                          # (S, D) f32

  # ---- FFN RMSNorm + SwiGLU (separate w1/w3 dots; no value slicing) ----
  var2 = jnp.mean(h_res * h_res, axis=-1, keepdims=True)
  hn = (h_res * jax.lax.rsqrt(var2 + eps) * fnw_ref[...]).astype(jnp.bfloat16)
  gate = jnp.dot(hn, w1_ref[...], preferred_element_type=jnp.float32)  # (S, H)
  up = jnp.dot(hn, w3_ref[...], preferred_element_type=jnp.float32)    # (S, H)
  act = (gate * jax.nn.sigmoid(gate) * up).astype(jnp.bfloat16)
  ff = jnp.dot(act, w2_ref[...], preferred_element_type=jnp.float32)

  out_ref[0] = h_res + ff


def _half_layout_perm(n_heads, head_dim):
  """Per-head column permutation: interleaved (even, odd) -> rotate-half."""
  idx = []
  for h in range(n_heads):
    base = h * head_dim
    idx.extend(base + np.arange(0, head_dim, 2))   # even lanes -> first half
    idx.extend(base + np.arange(1, head_dim, 2))   # odd lanes  -> second half
  return np.asarray(idx, dtype=np.int32)


def transformer_block(x, cos, sin, params, *, n_heads, n_kv_heads, eps):
  B, S, D = x.shape
  hd = D // n_heads
  qd = n_heads * hd
  kd = n_kv_heads * hd
  H = params["w1"].shape[1]

  # Host-side weight prep: fold the RoPE interleave->half permutation into
  # wq/wk, fuse QKV, cast matmul weights to bf16.  wo/w1/w2/w3 keep their
  # original (in, out) layout.
  wq_h = params["wq"][:, _half_layout_perm(n_heads, hd)]
  wk_h = params["wk"][:, _half_layout_perm(n_kv_heads, hd)]
  wqkv = jnp.concatenate([wq_h, wk_h, params["wv"]], axis=1).astype(jnp.bfloat16)
  wo = params["wo"].astype(jnp.bfloat16)                    # (qd, D)
  w1 = params["w1"].astype(jnp.bfloat16)
  w3 = params["w3"].astype(jnp.bfloat16)
  w2 = params["w2"].astype(jnp.bfloat16)

  # Small (S, head_dim) RoPE tables; sign folded into sin for the half layout.
  cos2 = jnp.concatenate([cos, cos], axis=-1).astype(jnp.float32)
  sin2 = jnp.concatenate([-sin, sin], axis=-1).astype(jnp.float32)

  kernel = functools.partial(
      transformer_block_kernel, n_heads=n_heads, n_kv_heads=n_kv_heads,
      head_dim=hd, eps=eps)

  full = lambda shape: pl.BlockSpec(shape, lambda b: (0,) * len(shape))

  # VMEM budget from actual buffer sizes; cap from the chip's real capacity.
  bf16_w_bytes = 2 * (D * (qd + 2 * kd) + qd * D + 2 * D * H + H * D)
  est = (
      2 * 2 * (S * D * 4)                      # x + out blocks (double-buffered)
      + 2 * 2 * (S * hd * 4)                   # cos/sin tables
      + 2 * 2 * (D * 4)                        # norm weights
      + 2 * bf16_w_bytes                       # weights (double-buffered)
      + S * (qd + 2 * kd) * (4 + 2)            # staged QKV f32 + rotated bf16
      + S * qd * 2)                            # per-head attention outputs
  try:
    cap = int(pltpu.get_tpu_info().vmem_capacity_bytes)
  except Exception:                            # conservative fallback (v7x TC)
    cap = 64 * 1024 * 1024
  vmem_bytes = int(min(cap - 2 * 1024 * 1024,
                       max(32 * 1024 * 1024, est + 4 * 1024 * 1024)))

  return pl.pallas_call(
      kernel,
      out_shape=jax.ShapeDtypeStruct((B, S, D), jnp.float32),
      grid=(B,),
      in_specs=[
          pl.BlockSpec((1, S, D), lambda b: (b, 0, 0)),     # x
          full((S, hd)), full((S, hd)),                     # cos_full, sin_signed
          full((1, D)),                                     # attention_norm.weight
          full((D, qd + 2 * kd)),                           # fused QKV weight
          full((qd, D)),                                    # wo
          full((1, D)),                                     # ffn_norm.weight
          full((D, H)),                                     # w1
          full((D, H)),                                     # w3
          full((H, D)),                                     # w2
      ],
      out_specs=pl.BlockSpec((1, S, D), lambda b: (b, 0, 0)),
      scratch_shapes=[
          pltpu.VMEM((S, qd + 2 * kd), jnp.float32),        # staged QKV (f32)
          pltpu.VMEM((S, qd + 2 * kd), jnp.bfloat16),       # rotated Q/K + V
          pltpu.VMEM((S, qd), jnp.bfloat16),                # per-head attn out
      ],
      compiler_params=pltpu.CompilerParams(
          dimension_semantics=("parallel",),
          vmem_limit_bytes=vmem_bytes),
  )(x, cos2, sin2, params["attn_norm"], wqkv, wo,
    params["ffn_norm"], w1, w3, w2)


# ---------------- pure-JAX reference (mirrors the PyTorch forward) -----------
def _rmsnorm(x, w, eps):
  return x * jax.lax.rsqrt(jnp.mean(x * x, axis=-1, keepdims=True) + eps) * w


def ref_transformer_block(x, mask, cos, sin, p, *, n_heads, n_kv_heads, eps):
  B, S, D = x.shape
  hd = D // n_heads
  n_rep = n_heads // n_kv_heads

  xn = _rmsnorm(x, p["attn_norm"], eps)
  xq = (xn @ p["wq"]).reshape(B, S, n_heads, hd)
  xk = (xn @ p["wk"]).reshape(B, S, n_kv_heads, hd)
  xv = (xn @ p["wv"]).reshape(B, S, n_kv_heads, hd)

  def rope(t):  # interleaved complex-pair rotation, as in apply_rotary_emb
    te, to = t[..., 0::2], t[..., 1::2]
    c = cos[None, :, None, :]
    s = sin[None, :, None, :]
    oe = te * c - to * s
    oo = te * s + to * c
    return jnp.stack([oe, oo], axis=-1).reshape(t.shape)

  xq, xk = rope(xq), rope(xk)
  keys = jnp.repeat(xk, n_rep, axis=2)
  vals = jnp.repeat(xv, n_rep, axis=2)
  scores = jnp.einsum("bqhd,bkhd->bhqk", xq, keys) / math.sqrt(hd)
  scores = scores + mask[None, None]
  probs = jax.nn.softmax(scores, axis=-1)
  o = jnp.einsum("bhqk,bkhd->bqhd", probs, vals).reshape(B, S, D)
  h = x + o @ p["wo"]

  hn = _rmsnorm(h, p["ffn_norm"], eps)
  g = hn @ p["w1"]
  u = hn @ p["w3"]
  return h + (g * jax.nn.sigmoid(g) * u) @ p["w2"]


if __name__ == "__main__":
  # Small ModelArgs-consistent shapes.
  B, S = 2, 8
  dim, n_heads, n_kv_heads = 32, 4, 2
  head_dim = dim // n_heads            # 8 (even, required for RoPE)
  multiple_of = 32
  norm_eps = 1e-5
  rope_theta = 500000.0

  # FeedForward hidden dim exactly as the module computes it.
  hidden = 4 * dim
  hidden = int(2 * hidden / 3)
  hidden = multiple_of * ((hidden + multiple_of - 1) // multiple_of)   # 96

  key = jax.random.PRNGKey(0)
  ks = jax.random.split(key, 9)
  init = lambda k, shape: (0.02 * jax.random.normal(k, shape)).astype(jnp.float32)

  params = {
      "wq": init(ks[0], (dim, n_heads * head_dim)),
      "wk": init(ks[1], (dim, n_kv_heads * head_dim)),
      "wv": init(ks[2], (dim, n_kv_heads * head_dim)),
      "wo": init(ks[3], (n_heads * head_dim, dim)),
      "w1": init(ks[4], (dim, hidden)),
      "w2": init(ks[5], (hidden, dim)),
      "w3": init(ks[6], (dim, hidden)),
      "attn_norm": jnp.ones((1, dim), jnp.float32),
      "ffn_norm": jnp.ones((1, dim), jnp.float32),
  }

  x = jax.random.normal(ks[7], (B, S, dim), dtype=jnp.float32)

  # Causal mask (start_pos = 0) for the reference; the kernel builds its own.
  mask = jnp.triu(jnp.full((S, S), float("-inf"), jnp.float32), k=1)

  # freqs_cis equivalent: cos/sin of shape (S, head_dim // 2).
  inv_freq = 1.0 / (rope_theta ** (np.arange(0, head_dim, 2, dtype=np.float32) / head_dim))
  angles = np.outer(np.arange(S, dtype=np.float32), inv_freq)
  cos = jnp.asarray(np.cos(angles))
  sin = jnp.asarray(np.sin(angles))

  out = transformer_block(x, cos, sin, params,
                          n_heads=n_heads, n_kv_heads=n_kv_heads, eps=norm_eps)
  out = jax.block_until_ready(out)

  ref = ref_transformer_block(x, mask, cos, sin, params,
                              n_heads=n_heads, n_kv_heads=n_kv_heads, eps=norm_eps)
  assert out.shape == (B, S, dim)
  # bf16 MXU operands in the kernel vs an all-f32 reference -> relaxed tolerance.
  assert jnp.allclose(out, ref, atol=2e-2, rtol=2e-2), "mismatch vs reference"

  print("KERNEL_OK")
</pallas_src>

<mosaic_0001>
module attributes {stable_mosaic.version = 11 : i64} {
  func.func @transformer_block_kernel(%arg0: i32, %arg1: memref<1x8x32xf32, #tpu.memory_space<vmem>>, %arg2: memref<8x8xf32, #tpu.memory_space<vmem>>, %arg3: memref<8x8xf32, #tpu.memory_space<vmem>>, %arg4: memref<1x32xf32, #tpu.memory_space<vmem>>, %arg5: memref<32x64xbf16, #tpu.memory_space<vmem>>, %arg6: memref<32x32xbf16, #tpu.memory_space<vmem>>, %arg7: memref<1x32xf32, #tpu.memory_space<vmem>>, %arg8: memref<32x96xbf16, #tpu.memory_space<vmem>>, %arg9: memref<32x96xbf16, #tpu.memory_space<vmem>>, %arg10: memref<96x32xbf16, #tpu.memory_space<vmem>>, %arg11: memref<1x8x32xf32, #tpu.memory_space<vmem>>, %arg12: memref<8x64xf32, #tpu.memory_space<vmem>>, %arg13: memref<8x64xbf16, #tpu.memory_space<vmem>>, %arg14: memref<8x32xbf16, #tpu.memory_space<vmem>>) attributes {dimension_semantics = [#tpu.dimension_semantics<parallel>], iteration_bounds = array<i64: 2>, scalar_prefetch = 0 : i64, scratch_operands = 3 : i64, tpu.core_type = #tpu.core_type<tc>, window_params = [{transform_indices = @transform_0, window_bounds = array<i64: 1, 8, 32>}, {pipeline_mode = #tpu.pipeline_mode<synchronous>, transform_indices = @transform_1, window_bounds = array<i64: 8, 8>}, {pipeline_mode = #tpu.pipeline_mode<synchronous>, transform_indices = @transform_2, window_bounds = array<i64: 8, 8>}, {pipeline_mode = #tpu.pipeline_mode<synchronous>, transform_indices = @transform_3, window_bounds = array<i64: 1, 32>}, {pipeline_mode = #tpu.pipeline_mode<synchronous>, transform_indices = @transform_4, window_bounds = array<i64: 32, 64>}, {pipeline_mode = #tpu.pipeline_mode<synchronous>, transform_indices = @transform_5, window_bounds = array<i64: 32, 32>}, {pipeline_mode = #tpu.pipeline_mode<synchronous>, transform_indices = @transform_6, window_bounds = array<i64: 1, 32>}, {pipeline_mode = #tpu.pipeline_mode<synchronous>, transform_indices = @transform_7, window_bounds = array<i64: 32, 96>}, {pipeline_mode = #tpu.pipeline_mode<synchronous>, transform_indices = @transform_8, window_bounds = array<i64: 32, 96>}, {pipeline_mode = #tpu.pipeline_mode<synchronous>, transform_indices = @transform_9, window_bounds = array<i64: 96, 32>}, {transform_indices = @transform_10, window_bounds = array<i64: 1, 8, 32>}]} {
    %c0 = arith.constant 0 : index
    %c0_0 = arith.constant 0 : index
    %c0_1 = arith.constant 0 : index
    %0 = vector.load %arg1[%c0, %c0_0, %c0_1] : memref<1x8x32xf32, #tpu.memory_space<vmem>>, vector<1x8x32xf32>
    %1 = vector.shape_cast %0 : vector<1x8x32xf32> to vector<8x32xf32>
    %2 = arith.mulf %1, %1 : vector<8x32xf32>
    %cst = arith.constant dense<0.000000e+00> : vector<8xf32>
    %3 = vector.multi_reduction <add>, %2, %cst [1] : vector<8x32xf32> to vector<8xf32>
    %4 = vector.shape_cast %3 : vector<8xf32> to vector<8x1xf32>
    %cst_2 = arith.constant 3.200000e+01 : f32
    %5 = vector.broadcast %cst_2 : f32 to vector<8x1xf32>
    %6 = arith.divf %4, %5 : vector<8x1xf32>
    %cst_3 = arith.constant 9.99999974E-6 : f32
    %7 = vector.broadcast %cst_3 : f32 to vector<8x1xf32>
    %8 = arith.addf %6, %7 : vector<8x1xf32>
    %9 = math.rsqrt %8 : vector<8x1xf32>
    %10 = vector.broadcast %9 : vector<8x1xf32> to vector<8x32xf32>
    %11 = arith.mulf %1, %10 : vector<8x32xf32>
    %c0_4 = arith.constant 0 : index
    %c0_5 = arith.constant 0 : index
    %12 = vector.load %arg4[%c0_4, %c0_5] : memref<1x32xf32, #tpu.memory_space<vmem>>, vector<1x32xf32>
    %13 = vector.broadcast %12 : vector<1x32xf32> to vector<8x32xf32>
    %14 = arith.mulf %11, %13 : vector<8x32xf32>
    %15 = arith.truncf %14 : vector<8x32xf32> to vector<8x32xbf16>
    %c0_6 = arith.constant 0 : index
    %c0_7 = arith.constant 0 : index
    %16 = vector.load %arg5[%c0_6, %c0_7] : memref<32x64xbf16, #tpu.memory_space<vmem>>, vector<32x64xbf16>
    %cst_8 = arith.constant dense<0.000000e+00> : vector<8x64xf32>
    %17 = tpu.matmul %15, %16, %cst_8 {dimension_numbers = #tpu.dot_dimension_numbers<[1], [0], [0], [1], [0, 0, 1, 1], [], []>} : vector<8x32xbf16>, vector<32x64xbf16>, vector<8x64xf32> -> vector<8x64xf32>
    %c0_9 = arith.constant 0 : index
    %c0_10 = arith.constant 0 : index
    %18 = vector.load %arg12[%c0_9, %c0_10] : memref<8x64xf32, #tpu.memory_space<vmem>>, vector<8x64xf32>
    tpu.vector_store %arg12[%c0_9, %c0_10], %17 {strides = array<i32>} : memref<8x64xf32, #tpu.memory_space<vmem>>, vector<8x64xf32>,
    %c0_11 = arith.constant 0 : index
    %c0_12 = arith.constant 0 : index
    %19 = vector.load %arg2[%c0_11, %c0_12] : memref<8x8xf32, #tpu.memory_space<vmem>>, vector<8x8xf32>
    %c0_13 = arith.constant 0 : index
    %c0_14 = arith.constant 0 : index
    %20 = vector.load %arg3[%c0_13, %c0_14] : memref<8x8xf32, #tpu.memory_space<vmem>>, vector<8x8xf32>
    %c0_15 = arith.constant 0 : index
    %c0_16 = arith.constant 0 : index
    %21 = vector.load %arg12[%c0_15, %c0_16] : memref<8x64xf32, #tpu.memory_space<vmem>>, vector<8x8xf32>
    %22 = arith.mulf %21, %19 : vector<8x8xf32>
    %23 = vector.extract_strided_slice %21 {offsets = [0, 4], sizes = [8, 4], strides = [1, 1]} : vector<8x8xf32> to vector<8x4xf32>
    %24 = vector.extract_strided_slice %21 {offsets = [0, 0], sizes = [8, 4], strides = [1, 1]} : vector<8x8xf32> to vector<8x4xf32>
    %25 = tpu.concatenate %23, %24 in 1 : vector<8x4xf32>, vector<8x4xf32> -> vector<8x8xf32>
    %26 = arith.mulf %25, %20 : vector<8x8xf32>
    %27 = arith.addf %22, %26 : vector<8x8xf32>
    %28 = arith.truncf %27 : vector<8x8xf32> to vector<8x8xbf16>
    %c0_17 = arith.constant 0 : index
    %c0_18 = arith.constant 0 : index
    %29 = vector.load %arg13[%c0_17, %c0_18] : memref<8x64xbf16, #tpu.memory_space<vmem>>, vector<8x8xbf16>
    tpu.vector_store %arg13[%c0_17, %c0_18], %28 {strides = array<i32>} : memref<8x64xbf16, #tpu.memory_space<vmem>>, vector<8x8xbf16>,
    %c0_19 = arith.constant 0 : index
    %c8 = arith.constant 8 : index
    %30 = vector.load %arg12[%c0_19, %c8] : memref<8x64xf32, #tpu.memory_space<vmem>>, vector<8x8xf32>
    %31 = arith.mulf %30, %19 : vector<8x8xf32>
    %32 = vector.extract_strided_slice %30 {offsets = [0, 4], sizes = [8, 4], strides = [1, 1]} : vector<8x8xf32> to vector<8x4xf32>
    %33 = vector.extract_strided_slice %30 {offsets = [0, 0], sizes = [8, 4], strides = [1, 1]} : vector<8x8xf32> to vector<8x4xf32>
    %34 = tpu.concatenate %32, %33 in 1 : vector<8x4xf32>, vector<8x4xf32> -> vector<8x8xf32>
    %35 = arith.mulf %34, %20 : vector<8x8xf32>
    %36 = arith.addf %31, %35 : vector<8x8xf32>
    %37 = arith.truncf %36 : vector<8x8xf32> to vector<8x8xbf16>
    %c0_20 = arith.constant 0 : index
    %c8_21 = arith.constant 8 : index
    %38 = vector.load %arg13[%c0_20, %c8_21] : memref<8x64xbf16, #tpu.memory_space<vmem>>, vector<8x8xbf16>
    tpu.vector_store %arg13[%c0_20, %c8_21], %37 {strides = array<i32>} : memref<8x64xbf16, #tpu.memory_space<vmem>>, vector<8x8xbf16>,
    %c0_22 = arith.constant 0 : index
    %c16 = arith.constant 16 : index
    %39 = vector.load %arg12[%c0_22, %c16] : memref<8x64xf32, #tpu.memory_space<vmem>>, vector<8x8xf32>
    %40 = arith.mulf %39, %19 : vector<8x8xf32>
    %41 = vector.extract_strided_slice %39 {offsets = [0, 4], sizes = [8, 4], strides = [1, 1]} : vector<8x8xf32> to vector<8x4xf32>
    %42 = vector.extract_strided_slice %39 {offsets = [0, 0], sizes = [8, 4], strides = [1, 1]} : vector<8x8xf32> to vector<8x4xf32>
    %43 = tpu.concatenate %41, %42 in 1 : vector<8x4xf32>, vector<8x4xf32> -> vector<8x8xf32>
    %44 = arith.mulf %43, %20 : vector<8x8xf32>
    %45 = arith.addf %40, %44 : vector<8x8xf32>
    %46 = arith.truncf %45 : vector<8x8xf32> to vector<8x8xbf16>
    %c0_23 = arith.constant 0 : index
    %c16_24 = arith.constant 16 : index
    %47 = vector.load %arg13[%c0_23, %c16_24] : memref<8x64xbf16, #tpu.memory_space<vmem>>, vector<8x8xbf16>
    tpu.vector_store %arg13[%c0_23, %c16_24], %46 {strides = array<i32>} : memref<8x64xbf16, #tpu.memory_space<vmem>>, vector<8x8xbf16>,
    %c0_25 = arith.constant 0 : index
    %c24 = arith.constant 24 : index
    %48 = vector.load %arg12[%c0_25, %c24] : memref<8x64xf32, #tpu.memory_space<vmem>>, vector<8x8xf32>
    %49 = arith.mulf %48, %19 : vector<8x8xf32>
    %50 = vector.extract_strided_slice %48 {offsets = [0, 4], sizes = [8, 4], strides = [1, 1]} : vector<8x8xf32> to vector<8x4xf32>
    %51 = vector.extract_strided_slice %48 {offsets = [0, 0], sizes = [8, 4], strides = [1, 1]} : vector<8x8xf32> to vector<8x4xf32>
    %52 = tpu.concatenate %50, %51 in 1 : vector<8x4xf32>, vector<8x4xf32> -> vector<8x8xf32>
    %53 = arith.mulf %52, %20 : vector<8x8xf32>
    %54 = arith.addf %49, %53 : vector<8x8xf32>
    %55 = arith.truncf %54 : vector<8x8xf32> to vector<8x8xbf16>
    %c0_26 = arith.constant 0 : index
    %c24_27 = arith.constant 24 : index
    %56 = vector.load %arg13[%c0_26, %c24_27] : memref<8x64xbf16, #tpu.memory_space<vmem>>, vector<8x8xbf16>
    tpu.vector_store %arg13[%c0_26, %c24_27], %55 {strides = array<i32>} : memref<8x64xbf16, #tpu.memory_space<vmem>>, vector<8x8xbf16>,
    %c0_28 = arith.constant 0 : index
    %c32 = arith.constant 32 : index
    %57 = vector.load %arg12[%c0_28, %c32] : memref<8x64xf32, #tpu.memory_space<vmem>>, vector<8x8xf32>
    %58 = arith.mulf %57, %19 : vector<8x8xf32>
    %59 = vector.extract_strided_slice %57 {offsets = [0, 4], sizes = [8, 4], strides = [1, 1]} : vector<8x8xf32> to vector<8x4xf32>
    %60 = vector.extract_strided_slice %57 {offsets = [0, 0], sizes = [8, 4], strides = [1, 1]} : vector<8x8xf32> to vector<8x4xf32>
    %61 = tpu.concatenate %59, %60 in 1 : vector<8x4xf32>, vector<8x4xf32> -> vector<8x8xf32>
    %62 = arith.mulf %61, %20 : vector<8x8xf32>
    %63 = arith.addf %58, %62 : vector<8x8xf32>
    %64 = arith.truncf %63 : vector<8x8xf32> to vector<8x8xbf16>
    %c0_29 = arith.constant 0 : index
    %c32_30 = arith.constant 32 : index
    %65 = vector.load %arg13[%c0_29, %c32_30] : memref<8x64xbf16, #tpu.memory_space<vmem>>, vector<8x8xbf16>
    tpu.vector_store %arg13[%c0_29, %c32_30], %64 {strides = array<i32>} : memref<8x64xbf16, #tpu.memory_space<vmem>>, vector<8x8xbf16>,
    %c0_31 = arith.constant 0 : index
    %c40 = arith.constant 40 : index
    %66 = vector.load %arg12[%c0_31, %c40] : memref<8x64xf32, #tpu.memory_space<vmem>>, vector<8x8xf32>
    %67 = arith.mulf %66, %19 : vector<8x8xf32>
    %68 = vector.extract_strided_slice %66 {offsets = [0, 4], sizes = [8, 4], strides = [1, 1]} : vector<8x8xf32> to vector<8x4xf32>
    %69 = vector.extract_strided_slice %66 {offsets = [0, 0], sizes = [8, 4], strides = [1, 1]} : vector<8x8xf32> to vector<8x4xf32>
    %70 = tpu.concatenate %68, %69 in 1 : vector<8x4xf32>, vector<8x4xf32> -> vector<8x8xf32>
    %71 = arith.mulf %70, %20 : vector<8x8xf32>
    %72 = arith.addf %67, %71 : vector<8x8xf32>
    %73 = arith.truncf %72 : vector<8x8xf32> to vector<8x8xbf16>
    %c0_32 = arith.constant 0 : index
    %c40_33 = arith.constant 40 : index
    %74 = vector.load %arg13[%c0_32, %c40_33] : memref<8x64xbf16, #tpu.memory_space<vmem>>, vector<8x8xbf16>
    tpu.vector_store %arg13[%c0_32, %c40_33], %73 {strides = array<i32>} : memref<8x64xbf16, #tpu.memory_space<vmem>>, vector<8x8xbf16>,
    %c0_34 = arith.constant 0 : index
    %c48 = arith.constant 48 : index
    %75 = vector.load %arg12[%c0_34, %c48] : memref<8x64xf32, #tpu.memory_space<vmem>>, vector<8x16xf32>
    %76 = arith.truncf %75 : vector<8x16xf32> to vector<8x16xbf16>
    %c0_35 = arith.constant 0 : index
    %c48_36 = arith.constant 48 : index
    %77 = vector.load %arg13[%c0_35, %c48_36] : memref<8x64xbf16, #tpu.memory_space<vmem>>, vector<8x16xbf16>
    tpu.vector_store %arg13[%c0_35, %c48_36], %76 {strides = array<i32>} : memref<8x64xbf16, #tpu.memory_space<vmem>>, vector<8x16xbf16>,
    %78 = tpu.iota {dimensions = array<i32: 0>} : vector<8x8xi32>
    %79 = tpu.iota {dimensions = array<i32: 1>} : vector<8x8xi32>
    %80 = arith.cmpi sle, %79, %78 : vector<8x8xi32>
    %c0_37 = arith.constant 0 : index
    %c0_38 = arith.constant 0 : index
    %81 = vector.load %arg13[%c0_37, %c0_38] : memref<8x64xbf16, #tpu.memory_space<vmem>>, vector<8x8xbf16>
    %c0_39 = arith.constant 0 : index
    %c32_40 = arith.constant 32 : index
    %82 = vector.load %arg13[%c0_39, %c32_40] : memref<8x64xbf16, #tpu.memory_space<vmem>>, vector<8x8xbf16>
    %c0_41 = arith.constant 0 : index
    %c48_42 = arith.constant 48 : index
    %83 = vector.load %arg13[%c0_41, %c48_42] : memref<8x64xbf16, #tpu.memory_space<vmem>>, vector<8x8xbf16>
    %cst_43 = arith.constant dense<0.000000e+00> : vector<8x8xf32>
    %84 = tpu.matmul %81, %82, %cst_43 {dimension_numbers = #tpu.dot_dimension_numbers<[1], [1], [0], [0], [0, 0, 1, 0], [], []>} : vector<8x8xbf16>, vector<8x8xbf16>, vector<8x8xf32> -> vector<8x8xf32>
    %cst_44 = arith.constant 0.353553385 : f32
    %85 = vector.broadcast %cst_44 : f32 to vector<8x8xf32>
    %86 = arith.mulf %84, %85 : vector<8x8xf32>
    %cst_45 = arith.constant -3.40282347E+38 : f32
    %87 = vector.broadcast %cst_45 : f32 to vector<8x8xf32>
    %88 = arith.select %80, %86, %87 : vector<8x8xi1>, vector<8x8xf32>
    %cst_46 = arith.constant dense<0xFF800000> : vector<8xf32>
    %89 = vector.multi_reduction <maximumf>, %88, %cst_46 [1] : vector<8x8xf32> to vector<8xf32>
    %90 = vector.shape_cast %89 : vector<8xf32> to vector<8x1xf32>
    %91 = vector.broadcast %90 : vector<8x1xf32> to vector<8x8xf32>
    %92 = arith.subf %88, %91 : vector<8x8xf32>
    %93 = math.exp %92 : vector<8x8xf32>
    %cst_47 = arith.constant dense<0.000000e+00> : vector<8xf32>
    %94 = vector.multi_reduction <add>, %93, %cst_47 [1] : vector<8x8xf32> to vector<8xf32>
    %95 = vector.shape_cast %94 : vector<8xf32> to vector<8x1xf32>
    %96 = tpu.reciprocal %95 {approx = true} : vector<8x1xf32> -> vector<8x1xf32>
    %97 = vector.broadcast %96 : vector<8x1xf32> to vector<8x8xf32>
    %98 = arith.mulf %93, %97 : vector<8x8xf32>
    %99 = arith.truncf %98 : vector<8x8xf32> to vector<8x8xbf16>
    %cst_48 = arith.constant dense<0.000000e+00> : vector<8x8xf32>
    %100 = tpu.matmul %99, %83, %cst_48 {dimension_numbers = #tpu.dot_dimension_numbers<[1], [0], [0], [1], [0, 0, 1, 1], [], []>} : vector<8x8xbf16>, vector<8x8xbf16>, vector<8x8xf32> -> vector<8x8xf32>
    %101 = arith.truncf %100 : vector<8x8xf32> to vector<8x8xbf16>
    %c0_49 = arith.constant 0 : index
    %c0_50 = arith.constant 0 : index
    %102 = vector.load %arg14[%c0_49, %c0_50] : memref<8x32xbf16, #tpu.memory_space<vmem>>, vector<8x8xbf16>
    tpu.vector_store %arg14[%c0_49, %c0_50], %101 {strides = array<i32>} : memref<8x32xbf16, #tpu.memory_space<vmem>>, vector<8x8xbf16>,
    %c0_51 = arith.constant 0 : index
    %c8_52 = arith.constant 8 : index
    %103 = vector.load %arg13[%c0_51, %c8_52] : memref<8x64xbf16, #tpu.memory_space<vmem>>, vector<8x8xbf16>
    %c0_53 = arith.constant 0 : index
    %c32_54 = arith.constant 32 : index
    %104 = vector.load %arg13[%c0_53, %c32_54] : memref<8x64xbf16, #tpu.memory_space<vmem>>, vector<8x8xbf16>
    %c0_55 = arith.constant 0 : index
    %c48_56 = arith.constant 48 : index
    %105 = vector.load %arg13[%c0_55, %c48_56] : memref<8x64xbf16, #tpu.memory_space<vmem>>, vector<8x8xbf16>
    %cst_57 = arith.constant dense<0.000000e+00> : vector<8x8xf32>
    %106 = tpu.matmul %103, %104, %cst_57 {dimension_numbers = #tpu.dot_dimension_numbers<[1], [1], [0], [0], [0, 0, 1, 0], [], []>} : vector<8x8xbf16>, vector<8x8xbf16>, vector<8x8xf32> -> vector<8x8xf32>
    %cst_58 = arith.constant 0.353553385 : f32
    %107 = vector.broadcast %cst_58 : f32 to vector<8x8xf32>
    %108 = arith.mulf %106, %107 : vector<8x8xf32>
    %cst_59 = arith.constant -3.40282347E+38 : f32
    %109 = vector.broadcast %cst_59 : f32 to vector<8x8xf32>
    %110 = arith.select %80, %108, %109 : vector<8x8xi1>, vector<8x8xf32>
    %cst_60 = arith.constant dense<0xFF800000> : vector<8xf32>
    %111 = vector.multi_reduction <maximumf>, %110, %cst_60 [1] : vector<8x8xf32> to vector<8xf32>
    %112 = vector.shape_cast %111 : vector<8xf32> to vector<8x1xf32>
    %113 = vector.broadcast %112 : vector<8x1xf32> to vector<8x8xf32>
    %114 = arith.subf %110, %113 : vector<8x8xf32>
    %115 = math.exp %114 : vector<8x8xf32>
    %cst_61 = arith.constant dense<0.000000e+00> : vector<8xf32>
    %116 = vector.multi_reduction <add>, %115, %cst_61 [1] : vector<8x8xf32> to vector<8xf32>
    %117 = vector.shape_cast %116 : vector<8xf32> to vector<8x1xf32>
    %118 = tpu.reciprocal %117 {approx = true} : vector<8x1xf32> -> vector<8x1xf32>
    %119 = vector.broadcast %118 : vector<8x1xf32> to vector<8x8xf32>
    %120 = arith.mulf %115, %119 : vector<8x8xf32>
    %121 = arith.truncf %120 : vector<8x8xf32> to vector<8x8xbf16>
    %cst_62 = arith.constant dense<0.000000e+00> : vector<8x8xf32>
    %122 = tpu.matmul %121, %105, %cst_62 {dimension_numbers = #tpu.dot_dimension_numbers<[1], [0], [0], [1], [0, 0, 1, 1], [], []>} : vector<8x8xbf16>, vector<8x8xbf16>, vector<8x8xf32> -> vector<8x8xf32>
    %123 = arith.truncf %122 : vector<8x8xf32> to vector<8x8xbf16>
    %c0_63 = arith.constant 0 : index
    %c8_64 = arith.constant 8 : index
    %124 = vector.load %arg14[%c0_63, %c8_64] : memref<8x32xbf16, #tpu.memory_space<vmem>>, vector<8x8xbf16>
    tpu.vector_store %arg14[%c0_63, %c8_64], %123 {strides = array<i32>} : memref<8x32xbf16, #tpu.memory_space<vmem>>, vector<8x8xbf16>,
    %c0_65 = arith.constant 0 : index
    %c16_66 = arith.constant 16 : index
    %125 = vector.load %arg13[%c0_65, %c16_66] : memref<8x64xbf16, #tpu.memory_space<vmem>>, vector<8x8xbf16>
    %c0_67 = arith.constant 0 : index
    %c40_68 = arith.constant 40 : index
    %126 = vector.load %arg13[%c0_67, %c40_68] : memref<8x64xbf16, #tpu.memory_space<vmem>>, vector<8x8xbf16>
    %c0_69 = arith.constant 0 : index
    %c56 = arith.constant 56 : index
    %127 = vector.load %arg13[%c0_69, %c56] : memref<8x64xbf16, #tpu.memory_space<vmem>>, vector<8x8xbf16>
    %cst_70 = arith.constant dense<0.000000e+00> : vector<8x8xf32>
    %128 = tpu.matmul %125, %126, %cst_70 {dimension_numbers = #tpu.dot_dimension_numbers<[1], [1], [0], [0], [0, 0, 1, 0], [], []>} : vector<8x8xbf16>, vector<8x8xbf16>, vector<8x8xf32> -> vector<8x8xf32>
    %cst_71 = arith.constant 0.353553385 : f32
    %129 = vector.broadcast %cst_71 : f32 to vector<8x8xf32>
    %130 = arith.mulf %128, %129 : vector<8x8xf32>
    %cst_72 = arith.constant -3.40282347E+38 : f32
    %131 = vector.broadcast %cst_72 : f32 to vector<8x8xf32>
    %132 = arith.select %80, %130, %131 : vector<8x8xi1>, vector<8x8xf32>
    %cst_73 = arith.constant dense<0xFF800000> : vector<8xf32>
    %133 = vector.multi_reduction <maximumf>, %132, %cst_73 [1] : vector<8x8xf32> to vector<8xf32>
    %134 = vector.shape_cast %133 : vector<8xf32> to vector<8x1xf32>
    %135 = vector.broadcast %134 : vector<8x1xf32> to vector<8x8xf32>
    %136 = arith.subf %132, %135 : vector<8x8xf32>
    %137 = math.exp %136 : vector<8x8xf32>
    %cst_74 = arith.constant dense<0.000000e+00> : vector<8xf32>
    %138 = vector.multi_reduction <add>, %137, %cst_74 [1] : vector<8x8xf32> to vector<8xf32>
    %139 = vector.shape_cast %138 : vector<8xf32> to vector<8x1xf32>
    %140 = tpu.reciprocal %139 {approx = true} : vector<8x1xf32> -> vector<8x1xf32>
    %141 = vector.broadcast %140 : vector<8x1xf32> to vector<8x8xf32>
    %142 = arith.mulf %137, %141 : vector<8x8xf32>
    %143 = arith.truncf %142 : vector<8x8xf32> to vector<8x8xbf16>
    %cst_75 = arith.constant dense<0.000000e+00> : vector<8x8xf32>
    %144 = tpu.matmul %143, %127, %cst_75 {dimension_numbers = #tpu.dot_dimension_numbers<[1], [0], [0], [1], [0, 0, 1, 1], [], []>} : vector<8x8xbf16>, vector<8x8xbf16>, vector<8x8xf32> -> vector<8x8xf32>
    %145 = arith.truncf %144 : vector<8x8xf32> to vector<8x8xbf16>
    %c0_76 = arith.constant 0 : index
    %c16_77 = arith.constant 16 : index
    %146 = vector.load %arg14[%c0_76, %c16_77] : memref<8x32xbf16, #tpu.memory_space<vmem>>, vector<8x8xbf16>
    tpu.vector_store %arg14[%c0_76, %c16_77], %145 {strides = array<i32>} : memref<8x32xbf16, #tpu.memory_space<vmem>>, vector<8x8xbf16>,
    %c0_78 = arith.constant 0 : index
    %c24_79 = arith.constant 24 : index
    %147 = vector.load %arg13[%c0_78, %c24_79] : memref<8x64xbf16, #tpu.memory_space<vmem>>, vector<8x8xbf16>
    %c0_80 = arith.constant 0 : index
    %c40_81 = arith.constant 40 : index
    %148 = vector.load %arg13[%c0_80, %c40_81] : memref<8x64xbf16, #tpu.memory_space<vmem>>, vector<8x8xbf16>
    %c0_82 = arith.constant 0 : index
    %c56_83 = arith.constant 56 : index
    %149 = vector.load %arg13[%c0_82, %c56_83] : memref<8x64xbf16, #tpu.memory_space<vmem>>, vector<8x8xbf16>
    %cst_84 = arith.constant dense<0.000000e+00> : vector<8x8xf32>
    %150 = tpu.matmul %147, %148, %cst_84 {dimension_numbers = #tpu.dot_dimension_numbers<[1], [1], [0], [0], [0, 0, 1, 0], [], []>} : vector<8x8xbf16>, vector<8x8xbf16>, vector<8x8xf32> -> vector<8x8xf32>
    %cst_85 = arith.constant 0.353553385 : f32
    %151 = vector.broadcast %cst_85 : f32 to vector<8x8xf32>
    %152 = arith.mulf %150, %151 : vector<8x8xf32>
    %cst_86 = arith.constant -3.40282347E+38 : f32
    %153 = vector.broadcast %cst_86 : f32 to vector<8x8xf32>
    %154 = arith.select %80, %152, %153 : vector<8x8xi1>, vector<8x8xf32>
    %cst_87 = arith.constant dense<0xFF800000> : vector<8xf32>
    %155 = vector.multi_reduction <maximumf>, %154, %cst_87 [1] : vector<8x8xf32> to vector<8xf32>
    %156 = vector.shape_cast %155 : vector<8xf32> to vector<8x1xf32>
    %157 = vector.broadcast %156 : vector<8x1xf32> to vector<8x8xf32>
    %158 = arith.subf %154, %157 : vector<8x8xf32>
    %159 = math.exp %158 : vector<8x8xf32>
    %cst_88 = arith.constant dense<0.000000e+00> : vector<8xf32>
    %160 = vector.multi_reduction <add>, %159, %cst_88 [1] : vector<8x8xf32> to vector<8xf32>
    %161 = vector.shape_cast %160 : vector<8xf32> to vector<8x1xf32>
    %162 = tpu.reciprocal %161 {approx = true} : vector<8x1xf32> -> vector<8x1xf32>
    %163 = vector.broadcast %162 : vector<8x1xf32> to vector<8x8xf32>
    %164 = arith.mulf %159, %163 : vector<8x8xf32>
    %165 = arith.truncf %164 : vector<8x8xf32> to vector<8x8xbf16>
    %cst_89 = arith.constant dense<0.000000e+00> : vector<8x8xf32>
    %166 = tpu.matmul %165, %149, %cst_89 {dimension_numbers = #tpu.dot_dimension_numbers<[1], [0], [0], [1], [0, 0, 1, 1], [], []>} : vector<8x8xbf16>, vector<8x8xbf16>, vector<8x8xf32> -> vector<8x8xf32>
    %167 = arith.truncf %166 : vector<8x8xf32> to vector<8x8xbf16>
    %c0_90 = arith.constant 0 : index
    %c24_91 = arith.constant 24 : index
    %168 = vector.load %arg14[%c0_90, %c24_91] : memref<8x32xbf16, #tpu.memory_space<vmem>>, vector<8x8xbf16>
    tpu.vector_store %arg14[%c0_90, %c24_91], %167 {strides = array<i32>} : memref<8x32xbf16, #tpu.memory_space<vmem>>, vector<8x8xbf16>,
    %c0_92 = arith.constant 0 : index
    %c0_93 = arith.constant 0 : index
    %169 = vector.load %arg14[%c0_92, %c0_93] : memref<8x32xbf16, #tpu.memory_space<vmem>>, vector<8x32xbf16>
    %c0_94 = arith.constant 0 : index
    %c0_95 = arith.constant 0 : index
    %170 = vector.load %arg6[%c0_94, %c0_95] : memref<32x32xbf16, #tpu.memory_space<vmem>>, vector<32x32xbf16>
    %cst_96 = arith.constant dense<0.000000e+00> : vector<8x32xf32>
    %171 = tpu.matmul %169, %170, %cst_96 {dimension_numbers = #tpu.dot_dimension_numbers<[1], [0], [0], [1], [0, 0, 1, 1], [], []>} : vector<8x32xbf16>, vector<32x32xbf16>, vector<8x32xf32> -> vector<8x32xf32>
    %172 = arith.addf %1, %171 : vector<8x32xf32>
    %173 = arith.mulf %172, %172 : vector<8x32xf32>
    %cst_97 = arith.constant dense<0.000000e+00> : vector<8xf32>
    %174 = vector.multi_reduction <add>, %173, %cst_97 [1] : vector<8x32xf32> to vector<8xf32>
    %175 = vector.shape_cast %174 : vector<8xf32> to vector<8x1xf32>
    %cst_98 = arith.constant 3.200000e+01 : f32
    %176 = vector.broadcast %cst_98 : f32 to vector<8x1xf32>
    %177 = arith.divf %175, %176 : vector<8x1xf32>
    %cst_99 = arith.constant 9.99999974E-6 : f32
    %178 = vector.broadcast %cst_99 : f32 to vector<8x1xf32>
    %179 = arith.addf %177, %178 : vector<8x1xf32>
    %180 = math.rsqrt %179 : vector<8x1xf32>
    %181 = vector.broadcast %180 : vector<8x1xf32> to vector<8x32xf32>
    %182 = arith.mulf %172, %181 : vector<8x32xf32>
    %c0_100 = arith.constant 0 : index
    %c0_101 = arith.constant 0 : index
    %183 = vector.load %arg7[%c0_100, %c0_101] : memref<1x32xf32, #tpu.memory_space<vmem>>, vector<1x32xf32>
    %184 = vector.broadcast %183 : vector<1x32xf32> to vector<8x32xf32>
    %185 = arith.mulf %182, %184 : vector<8x32xf32>
    %186 = arith.truncf %185 : vector<8x32xf32> to vector<8x32xbf16>
    %c0_102 = arith.constant 0 : index
    %c0_103 = arith.constant 0 : index
    %187 = vector.load %arg8[%c0_102, %c0_103] : memref<32x96xbf16, #tpu.memory_space<vmem>>, vector<32x96xbf16>
    %cst_104 = arith.constant dense<0.000000e+00> : vector<8x96xf32>
    %188 = tpu.matmul %186, %187, %cst_104 {dimension_numbers = #tpu.dot_dimension_numbers<[1], [0], [0], [1], [0, 0, 1, 1], [], []>} : vector<8x32xbf16>, vector<32x96xbf16>, vector<8x96xf32> -> vector<8x96xf32>
    %c0_105 = arith.constant 0 : index
    %c0_106 = arith.constant 0 : index
    %189 = vector.load %arg9[%c0_105, %c0_106] : memref<32x96xbf16, #tpu.memory_space<vmem>>, vector<32x96xbf16>
    %cst_107 = arith.constant dense<0.000000e+00> : vector<8x96xf32>
    %190 = tpu.matmul %186, %189, %cst_107 {dimension_numbers = #tpu.dot_dimension_numbers<[1], [0], [0], [1], [0, 0, 1, 1], [], []>} : vector<8x32xbf16>, vector<32x96xbf16>, vector<8x96xf32> -> vector<8x96xf32>
    %191 = arith.negf %188 : vector<8x96xf32>
    %192 = math.exp %191 : vector<8x96xf32>
    %cst_108 = arith.constant 1.000000e+00 : f32
    %193 = vector.broadcast %cst_108 : f32 to vector<8x96xf32>
    %194 = arith.addf %193, %192 : vector<8x96xf32>
    %195 = arith.divf %193, %194 : vector<8x96xf32>
    %196 = arith.mulf %188, %195 : vector<8x96xf32>
    %197 = arith.mulf %196, %190 : vector<8x96xf32>
    %198 = arith.truncf %197 : vector<8x96xf32> to vector<8x96xbf16>
    %c0_109 = arith.constant 0 : index
    %c0_110 = arith.constant 0 : index
    %199 = vector.load %arg10[%c0_109, %c0_110] : memref<96x32xbf16, #tpu.memory_space<vmem>>, vector<96x32xbf16>
    %cst_111 = arith.constant dense<0.000000e+00> : vector<8x32xf32>
    %200 = tpu.matmul %198, %199, %cst_111 {dimension_numbers = #tpu.dot_dimension_numbers<[1], [0], [0], [1], [0, 0, 1, 1], [], []>} : vector<8x96xbf16>, vector<96x32xbf16>, vector<8x32xf32> -> vector<8x32xf32>
    %201 = arith.addf %172, %200 : vector<8x32xf32>
    %c0_112 = arith.constant 0 : index
    %c0_113 = arith.constant 0 : index
    %c0_114 = arith.constant 0 : index
    %202 = vector.load %arg11[%c0_112, %c0_113, %c0_114] : memref<1x8x32xf32, #tpu.memory_space<vmem>>, vector<1x8x32xf32>
    %203 = vector.shape_cast %202 : vector<1x8x32xf32> to vector<8x32xf32>
    %204 = vector.shape_cast %201 : vector<8x32xf32> to vector<1x8x32xf32>
    tpu.vector_store %arg11[%c0_112, %c0_113, %c0_114], %204 {strides = array<i32>} : memref<1x8x32xf32, #tpu.memory_space<vmem>>, vector<1x8x32xf32>,
    return
  }
  func.func @transform_0(%arg0: i32) -> (i32, i32, i32) {
    %c0_i32 = arith.constant 0 : i32
    %c0_i32_0 = arith.constant 0 : i32
    %c0_i32_1 = arith.constant 0 : i32
    return %arg0, %c0_i32, %c0_i32_0 : i32, i32, i32
  }
  func.func @transform_1(%arg0: i32) -> (i32, i32) {
    %c0_i32 = arith.constant 0 : i32
    %c0_i32_0 = arith.constant 0 : i32
    %c0_i32_1 = arith.constant 0 : i32
    return %c0_i32, %c0_i32_0 : i32, i32
  }
  func.func @transform_2(%arg0: i32) -> (i32, i32) {
    %c0_i32 = arith.constant 0 : i32
    %c0_i32_0 = arith.constant 0 : i32
    %c0_i32_1 = arith.constant 0 : i32
    return %c0_i32, %c0_i32_0 : i32, i32
  }
  func.func @transform_3(%arg0: i32) -> (i32, i32) {
    %c0_i32 = arith.constant 0 : i32
    %c0_i32_0 = arith.constant 0 : i32
    %c0_i32_1 = arith.constant 0 : i32
    return %c0_i32, %c0_i32_0 : i32, i32
  }
  func.func @transform_4(%arg0: i32) -> (i32, i32) {
    %c0_i32 = arith.constant 0 : i32
    %c0_i32_0 = arith.constant 0 : i32
    %c0_i32_1 = arith.constant 0 : i32
    return %c0_i32, %c0_i32_0 : i32, i32
  }
  func.func @transform_5(%arg0: i32) -> (i32, i32) {
    %c0_i32 = arith.constant 0 : i32
    %c0_i32_0 = arith.constant 0 : i32
    %c0_i32_1 = arith.constant 0 : i32
    return %c0_i32, %c0_i32_0 : i32, i32
  }
  func.func @transform_6(%arg0: i32) -> (i32, i32) {
    %c0_i32 = arith.constant 0 : i32
    %c0_i32_0 = arith.constant 0 : i32
    %c0_i32_1 = arith.constant 0 : i32
    return %c0_i32, %c0_i32_0 : i32, i32
  }
  func.func @transform_7(%arg0: i32) -> (i32, i32) {
    %c0_i32 = arith.constant 0 : i32
    %c0_i32_0 = arith.constant 0 : i32
    %c0_i32_1 = arith.constant 0 : i32
    return %c0_i32, %c0_i32_0 : i32, i32
  }
  func.func @transform_8(%arg0: i32) -> (i32, i32) {
    %c0_i32 = arith.constant 0 : i32
    %c0_i32_0 = arith.constant 0 : i32
    %c0_i32_1 = arith.constant 0 : i32
    return %c0_i32, %c0_i32_0 : i32, i32
  }
  func.func @transform_9(%arg0: i32) -> (i32, i32) {
    %c0_i32 = arith.constant 0 : i32
    %c0_i32_0 = arith.constant 0 : i32
    %c0_i32_1 = arith.constant 0 : i32
    return %c0_i32, %c0_i32_0 : i32, i32
  }
  func.func @transform_10(%arg0: i32) -> (i32, i32, i32) {
    %c0_i32 = arith.constant 0 : i32
    %c0_i32_0 = arith.constant 0 : i32
    %c0_i32_1 = arith.constant 0 : i32
    return %arg0, %c0_i32, %c0_i32_0 : i32, i32, i32
  }
}

</mosaic_0001>

<bundles_post_ra>
// kernel: tpu_custom_call.1
= control target key start
LH: loop header
LB: loop body
LE: loop exit
PB: predicated region body
PF: predicated region fallthrough
CT: control target
= control target key end

     0   :  { %15 = vsyncpa [#allocation6], 0  ;;  %s2552_s0 = inlined_call_operand.vmem [shape: f32[2,8,32], index: 0, kind: input, shape index: {}]   ;;  %s2553_s1 = inlined_call_operand.hbm [shape: f32[8,8], index: 1, kind: input, shape index: {}]   ;;  %s2554_s2 = inlined_call_operand.hbm [shape: f32[8,8], index: 2, kind: input, shape index: {}]   ;;  %s2555_s3 = inlined_call_operand.hbm [shape: f32[1,32], index: 3, kind: input, shape index: {}]   ;;  %s2556_s4 = inlined_call_operand.vmem [shape: bf16[32,64], index: 4, kind: input, shape index: {}]   ;;  %s2557_s5 = inlined_call_operand.vmem [shape: bf16[32,32], index: 5, kind: input, shape index: {}]   ;;  %s2558_s6 = inlined_call_operand.hbm [shape: f32[1,32], index: 6, kind: input, shape index: {}]   ;;  %s2559_s7 = inlined_call_operand.vmem [shape: bf16[32,96], index: 7, kind: input, shape index: {}]   ;;  %s2560_s8 = inlined_call_operand.hbm [shape: bf16[32,96], index: 8, kind: input, shape index: {}]   ;;  %s2561_s9 = inlined_call_operand.vmem [shape: bf16[96,32], index: 9, kind: input, shape index: {}]   ;;  %s2562_s10 = inlined_call_operand.hbm [shape: f32[2,8,32], index: 10, kind: output, shape index: {}]  }
   0x1   :  { %16 = vsyncpa [#allocation9], 0 }
   0x2   :  { %17 = vsyncpa [#allocation12], 0 }
   0x3   :  { %18 = vsyncpa [#allocation7], 0 }
   0x4   :  { %20 = vsyncpa [#allocation7 + $0x1], 0  ;;  %s2183_s13 = smov 0   ;;  %s2185_s14 = smov 0  }
   0x5   :  { %s2187_s15 = smov 0   ;;  %s2189_s16 = smov 0  }
   0x6 LB: > { %s2204_s17 = sadd.s32 4294967295, %s2097_s16   ;;  %s1549_s18 = sadd.s32 4294967294, %s2097_s16   ;;  %s2097_s16 = sphi %s2189_s16, %s2585_s16   ;;  %s2093_s15 = sphi %s2187_s15, %s2584_s15   ;;  %s2089_s14 = sphi %s2185_s14, %s2583_s14   ;;  %s2085_s13 = sphi %s2183_s13, %s2582_s13  }
   0x7   : > { %s2208_s19 = sadd.s32 1, %s2097_s16   ;;  %s248_s20 = sadd.s32 1, %s2093_s15 }
   0x8   : > { %s245_s21 = ssub.s32 %s2097_s16, %s2208_s19  ;;  %p258_p0 = scmp.ne.s32.totalorder %s2093_s15, %s2089_s14 }
   0x9   : > { %p246_p1 = scmp.eq.s32.totalorder %s245_s21, 0  ;;  %p259_p2 = scmp.eq.s32.totalorder %s2204_s17, 1 }
   0xa   : > { %p264_p3 = scmp.ne.s32.totalorder %s2089_s14, %s2085_s13  ;;  %p265_p4 = scmp.eq.s32.totalorder %s1549_s18, 1 }
   0xb   : > { %s2219_s22 = scalar_select %p246_p1, %s2093_s15, %s248_s20  }
   0xc   : > { %p2221_p5 = por %p259_p2, %p258_p0  ;;  %p2225_p6 = por %p265_p4, %p264_p3 }
   0xd   : > { %2566 = sst [smem:[#allocation19_spill]] %s2219_s22  ;;  %p1550_p7 = scmp.ge.s32.totalorder %s2097_s16, 1 }
   0xe   : > { %s2567_s23 = scalar_select %p2221_p5, 1, 0 }
   0xf   : > { %s2568_s24 = scalar_select %p2225_p6, 1, 0 }
  0x10   : > { %p272_p8 = scmp.lt.s32.totalorder %s2097_s16, 3  ;;  %p2563_p9 = scmp.eq.s32.totalorder %s2204_s17, 0 }
  0x11   : > { %s2099_s26 = smov [#allocation8]   ;;  %s2100_s28 = smov [#allocation11]  }
  0x12   : > { %p2232_p10 = pnand %p1550_p7, %p272_p8  ;;  %s296_s27 = sshll.u32 %s2099_s26, 4  ;;  %s297_s27 = int_to_ptr.vmem [resolvable:$true] %s296_s27 }
  0x13   : > { %s324_s29 = sshll.u32 %s2100_s28, 4  ;;  %s2101_s11 = smov [#allocation5]   ;;  %s325_s29 = int_to_ptr.vmem [resolvable:$true] %s324_s29 }
  0x14   : > { %s2569_s25 = scalar_select %p2232_p10, 1, 0 }
  0x15   : > { %p1762_p11 = pneg %p2232_p10  ;;  %s285_s12 = sshll.u32 %s2101_s11, 4  ;;  %s2244_s12 = int_to_ptr.vmem [resolvable:$true] %s285_s12 }
  0x16   : > { %s1906_s20 = scalar_lea.vmem %s297_s27, 128  ;;  %p1914_p3 = scmp.lt.s32.totalorder %s297_s27, %s297_s27 }
  0x17   : > { %p2240_p12 = pnand %p2563_p9, %p1762_p11  ;;  %p1907_p0 = scmp.ne.s32.totalorder %s297_s27, %s1906_s20 }
  0x18   : > { %p1915_p4 = scmp.lt.s32.totalorder %s1906_s20, %s1906_s20 }
  0x19   : > { %p2248_p13 = pneg %p2240_p12 }
  0x1a   : > { %p1916_p7 = por %p1915_p4, %p1914_p3 }
  0x1b   : > { %p1909_p1 = pnand %p1907_p0, %p2248_p13 }
  0x1d   : > { %p1910_p2 = pneg %p1909_p1 }
  0x1f   : > { %p1917_p8 = pnand %p1916_p7, %p1910_p2 }
  0x21   : > { %1920 = shalt.err (!%p1917_p8)
}
  0x22   : > { %1768 = dma.hbm_to_vmem [thread:$0]  (!%p2240_p12), %s2554_s2, 128, %s297_s27, [#allocation9]  }
  0x23   : > { %s1932_s28 = scalar_lea.vmem %s325_s29, 16  ;;  %s1939_s11 = scalar_lea.vmem %s325_s29, 32 }
  0x24   : > { %p1933_p11 = scmp.ne.s32.totalorder %s325_s29, %s1932_s28  ;;  %p1940_p0 = scmp.lt.s32.totalorder %s325_s29, %s325_s29 }
  0x25   : > { %p1941_p1 = scmp.lt.s32.totalorder %s1939_s11, %s1932_s28 }
  0x26   : > { %p1935_p9 = pnand %p1933_p11, %p2248_p13 }
  0x27   : > { %p1942_p5 = por %p1941_p1, %p1940_p0 }
  0x28   : > { %p1936_p6 = pneg %p1935_p9 }
  0x2a   : > { %p1943_p10 = pnand %p1942_p5, %p1936_p6 }
  0x2c   : > { %1946 = shalt.err (!%p1943_p10)
}
  0x2d   : > { %1774 = dma.hbm_to_vmem [thread:$0]  (!%p2240_p12), %s2558_s6, 16, %s325_s29, [#allocation12]  }
  0x2e   : > { %s1958_s27 = scalar_lea.vmem %s2244_s12, 128  ;;  %p1966_p4 = scmp.lt.s32.totalorder %s2244_s12, %s2244_s12 }
  0x2f   : > { %p1959_p2 = scmp.ne.s32.totalorder %s2244_s12, %s1958_s27  ;;  %p1967_p7 = scmp.lt.s32.totalorder %s1958_s27, %s1958_s27 }
  0x31   : > { %p1961_p9 = pnand %p1959_p2, %p2248_p13  ;;  %p1968_p5 = por %p1967_p7, %p1966_p4 }
  0x33   : > { %p1962_p3 = pneg %p1961_p9 }
  0x35   : > { %p1969_p6 = pnand %p1968_p5, %p1962_p3 }
  0x37   : > { %1972 = shalt.err (!%p1969_p6)
}
  0x38   : > { %1765 = dma.hbm_to_vmem [thread:$0]  (!%p2240_p12), %s2553_s1, 128, %s2244_s12, [#allocation6]  }
  0x39   : > { %s2102_s29 = smov [#allocation10]   ;;  %s2103_s28 = smov [#allocation13]  }
  0x3a   : > { %s307_s26 = sshll.u32 %s2102_s29, 4  ;;  %s337_s11 = sshll.u32 %s2103_s28, 4  ;;  %s308_s26 = int_to_ptr.vmem [resolvable:$true] %s307_s26  ;;  %s338_s11 = int_to_ptr.vmem [resolvable:$true] %s337_s11 }
  0x3b   : > { %s1984_s20 = scalar_lea.vmem %s308_s26, 16  ;;  %s1991_s27 = scalar_lea.vmem %s308_s26, 32 }
  0x3c   : > { %p1985_p10 = scmp.ne.s32.totalorder %s308_s26, %s1984_s20  ;;  %p1992_p0 = scmp.lt.s32.totalorder %s308_s26, %s308_s26 }
  0x3d   : > { %p1993_p1 = scmp.lt.s32.totalorder %s1991_s27, %s1984_s20 }
  0x3e   : > { %p1987_p8 = pnand %p1985_p10, %p2248_p13 }
  0x3f   : > { %p1994_p2 = por %p1993_p1, %p1992_p0 }
  0x40   : > { %p1988_p11 = pneg %p1987_p8 }
  0x42   : > { %p1995_p9 = pnand %p1994_p2, %p1988_p11 }
  0x44   : > { %1998 = shalt.err (!%p1995_p9)
}
  0x45   : > { %1771 = dma.hbm_to_vmem [thread:$0]  (!%p2240_p12), %s2555_s3, 16, %s308_s26, [#allocation9]  }
  0x46   : > { %s2010_s21 = scalar_lea.vmem %s338_s11, 256  ;;  %p2018_p5 = scmp.lt.s32.totalorder %s338_s11, %s338_s11 }
  0x47   : > { %p2011_p3 = scmp.ne.s32.totalorder %s338_s11, %s2010_s21  ;;  %p2019_p6 = scmp.lt.s32.totalorder %s2010_s21, %s2010_s21 }
  0x49   : > { %p2013_p4 = pnand %p2011_p3, %p2248_p13  ;;  %p2020_p10 = por %p2019_p6, %p2018_p5 }
  0x4b   : > { %p2014_p7 = pneg %p2013_p4 }
  0x4d   : > { %p2021_p8 = pnand %p2020_p10, %p2014_p7 }
  0x4f   : > { %2024 = shalt.err (!%p2021_p8)
}
  0x50   : > { %s2104_s29 = smov 64   ;;  %s2105_s28 = smov 4  }
  0x51   : > { %1777 = dma.hbm_to_vmem [thread:$0]  (!%p2240_p12), %s2560_s8, 256, %s338_s11, [#allocation12], %s2104_s29, %s2104_s29, %s2105_s28  }
  0x52   : > { %p2572_p11 = scmp.ne.s32.totalorder %s2569_s25, 0 }
  0x53   : > { %p2573_p0 = scmp.eq.s32.totalorder (!%p2572_p11), %s2204_s17, 0 }
  0x54   : > { %363 = sbr.rel (%p2572_p11) target bundleno = 2558 (0x9fe), region = 60 }
  0x59   : > { %2068 = dma.done.wait (%p2573_p0), [#allocation6], 128   ;;  %p2574_p13 = pmov %p2573_p0 }
  0x5a   : > { %p2575_p1 = pmov %p2573_p0 }
  0x5b   : > { %2070 = vsyncadd (%p2574_p13), [#allocation6], 4294967168 }
  0x5c   : > { %2072 = dma.done.wait (%p2575_p1), [#allocation9], 144   ;;  %p2576_p2 = pmov %p2573_p0 }
  0x5d   : > { %p2577_p9 = pmov %p2573_p0 }
  0x5e   : > { %2074 = vsyncadd (%p2576_p2), [#allocation9], 4294967152 }
  0x5f   : > { %2076 = dma.done.wait (%p2577_p9), [#allocation12], 272   ;;  %p2578_p12 = pmov %p2573_p0 }
  0x60   : > { %p416_p3 = scmp.lt.s32.totalorder %s2204_s17, 1  ;;  %vm423_vm0 = vcmask 261120   ;;  %v1853_v3 = vld [vmem:[%s2556_s4 + $0x8] sm:$0xff]   ;;  %v2106_v4 = vmov 0.0   ;;  %vm2107_vm1 = vmmov 0   ;;  %v1854_v5 = vld [vmem:[%s2556_s4] sm:$0xff]  }
  0x61   : > { %2078 = vsyncadd (%p2578_p12), [#allocation12], 4294967024  ;;  %1644 = vmatprep.subr.bf16.mxu1 %v2106_v4  ;;  %1648 = vmatprep.mubr.msk.bf16.mxu1 %vm2107_vm1, %v2106_v4  ;;  %v1565_v10 = vld [vmem:[#allocation10] ss:$0 sm:$0xff]  ;;  %vm500_vm2 = vcmask 523264   ;;  %s2108_s28 = smov 124  }
  0x62   : > { %s417_s25 = scalar_select %p416_p3, %s2204_s17, 1  ;;  %1645 = vmatpush3.bf16.msra.mxu1 %v1853_v3  ;;  %1658 = vmatprep.subr.bf16.mxu0 %v2106_v4  ;;  %v502_v19 = vld [vmem:[#allocation5] sm:$0xff]  ;;  %vm513_vm3 = vcmask 31744   ;;  %v503_v20 = vld [vmem:[#allocation8] sm:$0xff]  ;;  %vm518_vm4 = vcmask 60416   ;;  %vm541_vm5 = vcmask 126016  }
  0x63   : > { %1646 = vmatprep.subr.bf16.mxu1 %v2106_v4  ;;  %1660 = vmatprep.mubr.msk.bf16.mxu0 %vm2107_vm1, %v2106_v4  ;;  %s2109_s20 = smov 116   ;;  %s2110_s27 = smov 108   ;;  %vm563_vm6 = vcmask 191616   ;;  %vm585_vm7 = vcmask 257216   ;;  %vm607_vm8 = vcmask 322816   ;;  %vm629_vm9 = vcmask 388416  }
  0x64   : > { %s1564_s30 = sshll.u32 %s417_s25, 3  ;;  %s2111_s25 = smov 84   ;;  %vm633_vm10 = vcmask 519552   ;;  %vm646_vm11 = vcmask 64512   ;;  %vm712_vm13 = vcmask 1043456   ;;  %vm1380_vm14 = vcmask 785408  }
  0x65   : > { %s419_s11 = scalar_lea.vmem %s2552_s0, %s1564_s30  ;;  %s2112_s30 = smov 8  }
  0x66   : > { %v2311_v0 = vld [vmem:[%s419_s11] sm:$0xff]  ;;  %1647 = vmatpush3.bf16.msra.mxu1 %v1854_v5  ;;  %s2113_s18 = smov 100   ;;  %s2114_s26 = smov 92  }
  0x67   : > { %v422_v1 = vmul.f32 %v2311_v0, %v2311_v0  ;;  %1652 = vmatprep.subr.bf16.mxu1 %v2106_v4  ;;  %s2115_s11 = smov 16   ;;  %s2116_s22 = smov 24  }
  0x68   : > { %s2117_s12 = smov 32   ;;  %s2118_s21 = smov 4  }
  0x69   : > { %v424_v2 = vsel %vm423_vm0, %v422_v1, 0.0  ;;  %s2119_s29 = smov 40   ;;  %p2579_p7 = scmp.ne.s32.totalorder %s2567_s23, 0 }
  0x6a   : > { %425 = vadd.xlane.f32.xlu0 %v424_v2 }
  0xf3   : > { %v426_v6 = vpop.xlane.xlu0 %425 }
  0xf4   : > { %v428_v7 = vmul.f32 0.03125, %v426_v6 }
  0xf6   : > { %v429_v8 = vadd.f32 1e-05, %v428_v7 }
  0xf8   : > { %1871 = vrsqrt.f32 %v429_v8 }
 0x105   : > { %v1872_v9 = vpop.eup %1871 }
 0x106   : > { %v431_v11 = vmul.f32 %v1872_v9, %v2311_v0 }
 0x108   : > { %v439_v12 = vmul.f32 %v1565_v10, %v431_v11 }
 0x10a   : > { %v440_v13 = vpack.c.bf16 %v439_v12, %v439_v12 }
 0x10c   : > { %1649 = vmatmul.mubr.msk.bf16.vlgmr.msra.gmra.mxu1 %vm423_vm0, %v440_v13 }
 0x10d   : > { %1654 = vmatprep.mubr.msk.bf16.mxu1 %vm2107_vm1, %v2106_v4 }
 0x1cc   : > { %v494_v14 = vpop.f32.mrf.mxu1 }
 0x1cd   : > { %501 = vst.msk [vmem:[#allocation2] sm:$0xff] %vm500_vm2, %v494_v14 }
 0x1ce   : > { %v1650_v15 = vpop.f32.mrf.mxu1 }
 0x1d0   : > { %v497_v16 = vpop.f32.mrf.mxu1 }
 0x1d2   : > { %v1651_v17 = vpop.f32.mrf.mxu1 }
 0x1d4   : > { %v2334_v18 = vld [vmem:[#allocation2] sm:$0xff] }
 0x1d5   : > { %530 = vrot.lane.b32.xlu1 %v2334_v18, %s2108_s28  ;;  %527 = vrot.lane.b32.xlu0 %v2334_v18, %s2109_s20  ;;  %v505_v48 = vmul.f32 %v2334_v18, %v502_v19  ;;  %v632_v11 = vpack.c.bf16 %v2334_v18, %v2334_v18 }
 0x1d9   : > { %549 = vrot.lane.b32.xlu1 %v2334_v18, %s2110_s27  ;;  %615 = vrot.lane.b32.xlu0 %v2334_v18, %s2111_s25  ;;  %s2123_s25 = smov 112  }
 0x1dd   : > { %552 = vrot.lane.b32.xlu1 %v2334_v18, %s2109_s20  ;;  %522 = vrot.lane.b32.xlu0 %v502_v19, %s2112_s30  ;;  %s2121_s20 = smov 88  }
 0x1e1   : > { %571 = vrot.lane.b32.xlu1 %v2334_v18, %s2113_s18  ;;  %507 = vrot.lane.b32.xlu0 %v2334_v18, %s2108_s28  ;;  %s2120_s28 = smov 96  }
 0x1e5   : > { %574 = vrot.lane.b32.xlu1 %v2334_v18, %s2110_s27  ;;  %s2122_s27 = smov 120  }
 0x1e9   : > { %593 = vrot.lane.b32.xlu1 %v2334_v18, %s2114_s26 }
 0x1ed   : > { %596 = vrot.lane.b32.xlu1 %v2334_v18, %s2113_s18  ;;  %s2124_s18 = smov 104  }
 0x1f1   : > { %618 = vrot.lane.b32.xlu1 %v2334_v18, %s2114_s26  ;;  %s2125_s26 = smov 80  }
 0x1f5   : > { %544 = vrot.lane.b32.xlu1 %v502_v19, %s2115_s11 }
 0x1f9   : > { %566 = vrot.lane.b32.xlu1 %v502_v19, %s2116_s22 }
 0x1fd   : > { %588 = vrot.lane.b32.xlu1 %v502_v19, %s2117_s12 }
 0x201   : > { %510 = vrot.lane.b32.xlu1 %v2334_v18, %s2118_s21 }
 0x205   : > { %610 = vrot.lane.b32.xlu1 %v502_v19, %s2119_s29 }
 0x247   : > { %v531_v21 = vpop.permute.xlu1 %530  ;;  %v528_v22 = vpop.permute.xlu0 %527 }
 0x248   : > { %v533_v23 = vsel %vm513_vm3, %v528_v22, %v531_v21 }
 0x249   : > { %v534_v24 = vmul.f32 %v533_v23, %v503_v20 }
 0x24b   : > { %v550_v25 = vpop.permute.xlu1 %549  ;;  %536 = vrot.lane.b32.xlu0 %v534_v24, %s2112_s30  ;;  %v616_v37 = vpop.permute.xlu0 %615 }
 0x24f   : > { %v553_v26 = vpop.permute.xlu1 %552  ;;  %v523_v43 = vpop.permute.xlu0 %522 }
 0x250   : > { %v555_v27 = vsel %vm513_vm3, %v550_v25, %v553_v26  ;;  %v525_v52 = vmul.f32 %v523_v43, %v2334_v18 }
 0x251   : > { %v556_v28 = vmul.f32 %v555_v27, %v503_v20 }
 0x253   : > { %v572_v29 = vpop.permute.xlu1 %571  ;;  %558 = vrot.lane.b32.xlu0 %v556_v28, %s2115_s11  ;;  %v508_v45 = vpop.permute.xlu0 %507  ;;  %v635_v28 = vlaneseq }
 0x257   : > { %v575_v30 = vpop.permute.xlu1 %574 }
 0x258   : > { %v577_v31 = vsel %vm513_vm3, %v572_v29, %v575_v30  ;;  %v636_v29 = vshrl.u32 %v635_v28, 7  ;;  %v638_v30 = vand.u32 127, %v635_v28 }
 0x259   : > { %v578_v32 = vmul.f32 %v577_v31, %v503_v20 }
 0x25a   : > { %vm639_vm12 = vcmp.le.s32.totalorder %v638_v30, %v636_v29 }
 0x25b   : > { %v594_v33 = vpop.permute.xlu1 %593  ;;  %580 = vrot.lane.b32.xlu0 %v578_v32, %s2116_s22 }
 0x25f   : > { %v597_v34 = vpop.permute.xlu1 %596 }
 0x260   : > { %v599_v35 = vsel %vm513_vm3, %v594_v33, %v597_v34 }
 0x261   : > { %v600_v36 = vmul.f32 %v599_v35, %v503_v20 }
 0x263   : > { %v619_v38 = vpop.permute.xlu1 %618  ;;  %602 = vrot.lane.b32.xlu0 %v600_v36, %s2117_s12  ;;  %s2126_s12 = smov 72  }
 0x264   : > { %v621_v39 = vsel %vm513_vm3, %v616_v37, %v619_v38 }
 0x265   : > { %v622_v40 = vmul.f32 %v621_v39, %v503_v20 }
 0x267   : > { %v545_v41 = vpop.permute.xlu1 %544  ;;  %624 = vrot.lane.b32.xlu1 %v622_v40, %s2119_s29 }
 0x268   : > { %v547_v56 = vmul.f32 %v545_v41, %v2334_v18 }
 0x26b   : > { %v567_v42 = vpop.permute.xlu1 %566 }
 0x26c   : > { %v569_v60 = vmul.f32 %v567_v42, %v2334_v18 }
 0x26f   : > { %v589_v44 = vpop.permute.xlu1 %588 }
 0x270   : > { %v591_v1 = vmul.f32 %v589_v44, %v2334_v18 }
 0x273   : > { %v511_v46 = vpop.permute.xlu1 %510 }
 0x274   : > { %v514_v47 = vsel %vm513_vm3, %v508_v45, %v511_v46 }
 0x275   : > { %v515_v49 = vmul.f32 %v514_v47, %v503_v20 }
 0x277   : > { %v516_v50 = vadd.f32 %v515_v49, %v505_v48  ;;  %v611_v2 = vpop.permute.xlu1 %610 }
 0x278   : > { %v613_v6 = vmul.f32 %v611_v2, %v2334_v18 }
 0x279   : > { %v517_v51 = vpack.c.bf16 %v516_v50, %v516_v50 }
 0x27b   : > { %519 = vst.msk [vmem:[#allocation3] sm:$0xf] %vm518_vm4, %v517_v51 }
 0x2bd   : > { %v537_v53 = vpop.permute.xlu0 %536 }
 0x2be   : > { %v539_v54 = vadd.f32 %v537_v53, %v525_v52 }
 0x2c0   : > { %v540_v55 = vpack.c.bf16 %v539_v54, %v539_v54 }
 0x2c2   : > { %542 = vst.msk [vmem:[#allocation3] sm:$0xf] %vm541_vm5, %v540_v55 }
 0x2c5   : > { %v559_v57 = vpop.permute.xlu0 %558 }
 0x2c6   : > { %v561_v58 = vadd.f32 %v559_v57, %v547_v56 }
 0x2c8   : > { %v562_v59 = vpack.c.bf16 %v561_v58, %v561_v58 }
 0x2ca   : > { %564 = vst.msk [vmem:[#allocation3] sm:$0xf] %vm563_vm6, %v562_v59 }
 0x2cd   : > { %v581_v61 = vpop.permute.xlu0 %580 }
 0x2ce   : > { %v583_v62 = vadd.f32 %v581_v61, %v569_v60 }
 0x2d0   : > { %v584_v63 = vpack.c.bf16 %v583_v62, %v583_v62 }
 0x2d2   : > { %586 = vst.msk [vmem:[#allocation3] sm:$0xf] %vm585_vm7, %v584_v63 }
 0x2d5   : > { %v603_v3 = vpop.permute.xlu0 %602 }
 0x2d6   : > { %v605_v5 = vadd.f32 %v603_v3, %v591_v1 }
 0x2d8   : > { %v606_v7 = vpack.c.bf16 %v605_v5, %v605_v5 }
 0x2d9   : > { %v625_v8 = vpop.permute.xlu1 %624 }
 0x2da   : > { %608 = vst.msk [vmem:[#allocation3] sm:$0xf] %vm607_vm8, %v606_v7  ;;  %v627_v9 = vadd.f32 %v625_v8, %v613_v6 }
 0x2dc   : > { %v628_v10 = vpack.c.bf16 %v627_v9, %v627_v9 }
 0x2de   : > { %630 = vst.msk [vmem:[#allocation3] sm:$0xf] %vm629_vm9, %v628_v10 }
 0x2df   : > { %634 = vst.msk [vmem:[#allocation3] sm:$0xf] %vm633_vm10, %v632_v11 }
 0x2e6   : > { %v2372_v12 = vld [vmem:[#allocation3] ss:$0 sps:$4 sm:$0xff]  }
 0x2e7   : > { %v640_v13 = vld [vmem:[#allocation3] sm:$0xf]  ;;  %764 = vrot.lane.b32.xlu1 %v2372_v12, %s2120_s28 }
 0x2e8   : > { %v2374_v14 = vcombine.low %v640_v13, %v640_v13  ;;  %v2378_v15 = vld [vmem:[#allocation3] ss:$0 sps:$4 sm:$0xff]  }
 0x2e9   : > { %v2382_v16 = vld [vmem:[#allocation3] ss:$0 sps:$4 sm:$0xff]  }
 0x2ea   : > { %644 = vrot.lane.b32.xlu0 %v2374_v14, %s2120_s28 }
 0x2eb   : > { %888 = vrot.lane.b32.xlu1 %v2378_v15, %s2121_s20 }
 0x2ee   : > { %762 = vrot.lane.b32.xlu0 %v2372_v12, %s2122_s27 }
 0x2ef   : > { %1012 = vrot.lane.b32.xlu1 %v2382_v16, %s2121_s20 }
 0x2f2   : > { %886 = vrot.lane.b32.xlu0 %v2378_v15, %s2123_s25  ;;  %s413_s25 = sand.u32 1, %s2089_s14  }
 0x2f6   : > { %1010 = vrot.lane.b32.xlu0 %v2382_v16, %s2124_s18  ;;  %s1563_s18 = sshll.u32 %s413_s25, 3 }
 0x359   : > { %v765_v19 = vpop.permute.xlu1 %764 }
 0x35a   : > { %v770_v20 = vsel %vm646_vm11, %v765_v19, 0 }
 0x35c   : > { %v645_v17 = vpop.permute.xlu0 %644 }
 0x35d   : > { %v651_v18 = vsel %vm646_vm11, %v645_v17, 0  ;;  %v889_v21 = vpop.permute.xlu1 %888 }
 0x35e   : > { %1653 = vmatpush3.bf16.xpose.msra.mxu1 %v651_v18  ;;  %v894_v23 = vsel %vm646_vm11, %v889_v21, 0 }
 0x35f   : > { %1664 = vmatprep.subr.bf16.mxu1 %v2106_v4 }
 0x360   : > { %v763_v22 = vpop.permute.xlu0 %762 }
 0x361   : > { %v1013_v24 = vpop.permute.xlu1 %1012 }
 0x362   : > { %v1018_v26 = vsel %vm646_vm11, %v1013_v24, 0 }
 0x364   : > { %v887_v25 = vpop.permute.xlu0 %886 }
 0x365   : > { %1655 = vmatmul.mubr.msk.bf16.vlgmr.msra.gmra.mxu1 %vm646_vm11, %v640_v13 }
 0x366   : > { %1665 = vmatpush3.bf16.xpose.msra.mxu1 %v770_v20  ;;  %1666 = vmatprep.mubr.msk.bf16.mxu1 %vm2107_vm1, %v2106_v4 }
 0x367   : > { %1676 = vmatprep.subr.bf16.mxu1 %v2106_v4 }
 0x368   : > { %v1011_v27 = vpop.permute.xlu0 %1010 }
 0x36d   : > { %1667 = vmatmul.mubr.msk.bf16.vlgmr.msra.gmra.mxu1 %vm646_vm11, %v763_v22 }
 0x36e   : > { %1677 = vmatpush3.bf16.xpose.msra.mxu1 %v894_v23  ;;  %1678 = vmatprep.mubr.msk.bf16.mxu1 %vm2107_vm1, %v2106_v4 }
 0x36f   : > { %1688 = vmatprep.subr.bf16.mxu1 %v2106_v4 }
 0x375   : > { %1679 = vmatmul.mubr.msk.bf16.vlgmr.msra.gmra.mxu1 %vm646_vm11, %v887_v25 }
 0x376   : > { %1689 = vmatpush3.bf16.xpose.msra.mxu1 %v1018_v26  ;;  %1690 = vmatprep.mubr.msk.bf16.mxu1 %vm2107_vm1, %v2106_v4 }
 0x377   : > { %1700 = vmatprep.subr.bf16.mxu1 %v2106_v4 }
 0x37d   : > { %1691 = vmatmul.mubr.msk.bf16.vlgmr.msra.gmra.mxu1 %vm646_vm11, %v1011_v27 }
 0x37e   : > { %1704 = vmatprep.mubr.msk.bf16.mxu1 %vm2107_vm1, %v2106_v4 }
 0x425   : > { %v687_v31 = vpop.f32.mrf.mxu1 }
 0x426   : > { %v693_v32 = vmul.f32 0.35355338, %v687_v31 }
 0x427   : > { %v1656_v33 = vpop.f32.mrf.mxu1 }
 0x428   : > { %v694_v34 = vsel %vm639_vm12, %v693_v32, -3.4028235e+38 }
 0x429   : > { %v690_v35 = vpop.f32.mrf.mxu1  ;;  %v695_v36 = vsel %vm646_vm11, %v694_v34, -inf }
 0x42a   : > { %696 = vmax.xlane.f32.xlu1 %v695_v36 }
 0x42b   : > { %v1657_v37 = vpop.f32.mrf.mxu1 }
 0x42d   : > { %v806_v38 = vpop.f32.mrf.mxu1 }
 0x42e   : > { %v812_v39 = vmul.f32 0.35355338, %v806_v38 }
 0x42f   : > { %v1668_v40 = vpop.f32.mrf.mxu1 }
 0x430   : > { %v813_v41 = vsel %vm639_vm12, %v812_v39, -3.4028235e+38 }
 0x431   : > { %v809_v42 = vpop.f32.mrf.mxu1  ;;  %v814_v43 = vsel %vm646_vm11, %v813_v41, -inf }
 0x432   : > { %815 = vmax.xlane.f32.xlu0 %v814_v43 }
 0x433   : > { %v1669_v44 = vpop.f32.mrf.mxu1 }
 0x435   : > { %v930_v45 = vpop.f32.mrf.mxu1 }
 0x436   : > { %v936_v46 = vmul.f32 0.35355338, %v930_v45 }
 0x437   : > { %v1680_v47 = vpop.f32.mrf.mxu1 }
 0x438   : > { %v937_v48 = vsel %vm639_vm12, %v936_v46, -3.4028235e+38 }
 0x439   : > { %v933_v49 = vpop.f32.mrf.mxu1  ;;  %v938_v50 = vsel %vm646_vm11, %v937_v48, -inf }
 0x43a   : > { %939 = vmax.xlane.f32.xlu0 %v938_v50 }
 0x43b   : > { %v1681_v51 = vpop.f32.mrf.mxu1 }
 0x43d   : > { %v1054_v52 = vpop.f32.mrf.mxu1 }
 0x43e   : > { %v1060_v53 = vmul.f32 0.35355338, %v1054_v52  ;;  %v1859_v52 = vld [vmem:[%s2557_s5 + $0x8] sm:$0xff]  }
 0x43f   : > { %v1692_v54 = vpop.f32.mrf.mxu1  ;;  %1701 = vmatpush3.bf16.msra.mxu1 %v1859_v52 }
 0x440   : > { %v1061_v55 = vsel %vm639_vm12, %v1060_v53, -3.4028235e+38  ;;  %1702 = vmatprep.subr.bf16.mxu1 %v2106_v4 }
 0x441   : > { %v1057_v56 = vpop.f32.mrf.mxu1  ;;  %v1062_v57 = vsel %vm646_vm11, %v1061_v55, -inf }
 0x442   : > { %1063 = vmax.xlane.f32.xlu1 %v1062_v57 }
 0x443   : > { %v1693_v58 = vpop.f32.mrf.mxu1 }
 0x4b3   : > { %v697_v59 = vpop.xlane.xlu1 %696 }
 0x4b4   : > { %v698_v60 = vsub.f32 %v694_v34, %v697_v59 }
 0x4b6   : > { %v699_v61 = vmul.f32 1.442695, %v698_v60 }
 0x4b8   : > { %1873 = vpow2.f32 %v699_v61 }
 0x4bb   : > { %v816_v62 = vpop.xlane.xlu0 %815 }
 0x4bc   : > { %v817_v63 = vsub.f32 %v813_v41, %v816_v62 }
 0x4be   : > { %v818_v1 = vmul.f32 1.442695, %v817_v63 }
 0x4c0   : > { %1875 = vpow2.f32 %v818_v1 }
 0x4c3   : > { %v940_v2 = vpop.xlane.xlu0 %939 }
 0x4c4   : > { %v941_v3 = vsub.f32 %v937_v48, %v940_v2 }
 0x4c5   : > { %v1874_v5 = vpop.eup %1873 }
 0x4c6   : > { %v942_v6 = vmul.f32 1.442695, %v941_v3  ;;  %v701_v7 = vsel %vm646_vm11, %v1874_v5, 0.0 }
 0x4c7   : > { %702 = vadd.xlane.f32.xlu0 %v701_v7 }
 0x4c8   : > { %1877 = vpow2.f32 %v942_v6 }
 0x4cb   : > { %v1064_v13 = vpop.xlane.xlu1 %1063 }
 0x4cc   : > { %v1065_v17 = vsub.f32 %v1061_v55, %v1064_v13  ;;  %v1860_v55 = vld [vmem:[%s2557_s5] sm:$0xff]   ;;  %v1861_v13 = vld [vmem:[%s2559_s7 + $0x8] sm:$0xff]  }
 0x4cd   : > { %v1876_v8 = vpop.eup %1875  ;;  %1703 = vmatpush3.bf16.msra.mxu1 %v1860_v55 }
 0x4ce   : > { %v820_v9 = vsel %vm646_vm11, %v1876_v8, 0.0  ;;  %v1066_v18 = vmul.f32 1.442695, %v1065_v17  ;;  %1716 = vmatprep.subr.bf16.mxu1 %v2106_v4  ;;  %v1862_v17 = vld [vmem:[#allocation13 + $0x8] sm:$0xff]  }
 0x4cf   : > { %821 = vadd.xlane.f32.xlu1 %v820_v9 }
 0x4d0   : > { %1879 = vpow2.f32 %v1066_v18  ;;  %v1864_v18 = vld [vmem:[#allocation13] sm:$0xff]  }
 0x4d5   : > { %v1878_v10 = vpop.eup %1877 }
 0x4d6   : > { %v944_v11 = vsel %vm646_vm11, %v1878_v10, 0.0 }
 0x4d7   : > { %945 = vadd.xlane.f32.xlu0 %v944_v11 }
 0x4dd   : > { %v1880_v19 = vpop.eup %1879 }
 0x4de   : > { %v1068_v20 = vsel %vm646_vm11, %v1880_v19, 0.0 }
 0x4e0   : > { %826 = vrot.lane.b32.xlu1 %v2372_v12, %s2125_s26 }
 0x4ed   : > { %707 = vrot.lane.b32.xlu0 %v2374_v14, %s2125_s26  ;;  %s1603_s26 = sshll.u32 %s2204_s17, 7  ;;  %s1427_s17 = scalar_lea.sflag [#allocation7], %s413_s25 }
 0x4ee   : > { %s2510_s20 = scalar_lea.hbm %s2562_s10, %s1603_s26 }
 0x4f1   : > { %1074 = vrot.lane.b32.xlu0 %v2382_v16, %s2126_s12 }
 0x504   : > { %1069 = vadd.xlane.f32.xlu1 %v1068_v20 }
 0x515   : > { %950 = vrot.lane.b32.xlu1 %v2378_v15, %s2126_s12  ;;  %s415_s12 = scalar_lea.vmem [#allocation14], %s1563_s18 }
 0x516   : > { %s1440_s21 = sshll.u32 %s415_s12, 4  ;;  %s2512_s21 = int_to_ptr.vmem [resolvable:$true] %s1440_s21 }
 0x550   : > { %v703_v21 = vpop.xlane.xlu0 %702 }
 0x551   : > { %1881 = vrcp.f32 %v703_v21 }
 0x558   : > { %v822_v22 = vpop.xlane.xlu1 %821 }
 0x559   : > { %1883 = vrcp.f32 %v822_v22 }
 0x55c   : > { %v827_v26 = vpop.permute.xlu1 %826 }
 0x55d   : > { %v832_v28 = vsel %vm712_vm13, %v827_v26, 0  ;;  %v1866_v26 = vld [vmem:[%s2561_s9 + $0x20] sm:$0xff]  }
 0x55e   : > { %v1882_v12 = vpop.eup %1881 }
 0x55f   : > { %v705_v24 = vmul.f32 %v1882_v12, %v1874_v5  ;;  %v1587_v12 = vld [vmem:[#allocation11] ss:$0 sm:$0xff] }
 0x560   : > { %v946_v23 = vpop.xlane.xlu0 %945 }
 0x561   : > { %v706_v16 = vpack.c.bf16 %v705_v24, %v705_v24  ;;  %1885 = vrcp.f32 %v946_v23 }
 0x564   : > { %v708_v14 = vpop.permute.xlu0 %707 }
 0x565   : > { %v714_v25 = vsel %vm712_vm13, %v708_v14, 0 }
 0x566   : > { %1659 = vmatpush3.bf16.msra.mxu0 %v714_v25  ;;  %v1884_v27 = vpop.eup %1883  ;;  %v1865_v25 = vld [vmem:[%s2561_s9 + $0x28] sm:$0xff]  }
 0x567   : > { %1670 = vmatprep.subr.bf16.mxu0 %v2106_v4  ;;  %v824_v15 = vmul.f32 %v1884_v27, %v1876_v8  ;;  %v1868_v27 = vld [vmem:[%s2561_s9 + $0x10] sm:$0xff]  }
 0x568   : > { %v1075_v35 = vpop.permute.xlu0 %1074 }
 0x569   : > { %1661 = vmatmul.mubr.msk.bf16.vlgmr.msra.gmra.mxu0 %vm646_vm11, %v706_v16  ;;  %v825_v29 = vpack.c.bf16 %v824_v15, %v824_v15  ;;  %v1080_v37 = vsel %vm712_vm13, %v1075_v35, 0  ;;  %v1867_v16 = vld [vmem:[%s2561_s9 + $0x18] sm:$0xff]   ;;  %v1870_v15 = vld [vmem:[%s2561_s9] sm:$0xff]  }
 0x56a   : > { %1671 = vmatpush3.bf16.msra.mxu0 %v832_v28  ;;  %1672 = vmatprep.mubr.msk.bf16.mxu0 %vm2107_vm1, %v2106_v4  ;;  %v1869_v28 = vld [vmem:[%s2561_s9 + $0x8] sm:$0xff]  }
 0x56b   : > { %1682 = vmatprep.subr.bf16.mxu0 %v2106_v4 }
 0x56e   : > { %v1886_v30 = vpop.eup %1885 }
 0x56f   : > { %v948_v32 = vmul.f32 %v1886_v30, %v1878_v10 }
 0x571   : > { %1673 = vmatmul.mubr.msk.bf16.vlgmr.msra.gmra.mxu0 %vm646_vm11, %v825_v29  ;;  %v949_v36 = vpack.c.bf16 %v948_v32, %v948_v32 }
 0x572   : > { %1684 = vmatprep.mubr.msk.bf16.mxu0 %vm2107_vm1, %v2106_v4 }
 0x58d   : > { %v1070_v31 = vpop.xlane.xlu1 %1069 }
 0x58e   : > { %1887 = vrcp.f32 %v1070_v31 }
 0x591   : > { %v951_v33 = vpop.permute.xlu1 %950 }
 0x592   : > { %v956_v34 = vsel %vm712_vm13, %v951_v33, 0 }
 0x593   : > { %1683 = vmatpush3.bf16.msra.mxu0 %v956_v34 }
 0x594   : > { %1694 = vmatprep.subr.bf16.mxu0 %v2106_v4 }
 0x596   : > { %1685 = vmatmul.mubr.msk.bf16.vlgmr.msra.gmra.mxu0 %vm646_vm11, %v949_v36 }
 0x597   : > { %1695 = vmatpush3.bf16.msra.mxu0 %v1080_v37  ;;  %1696 = vmatprep.mubr.msk.bf16.mxu0 %vm2107_vm1, %v2106_v4 }
 0x598   : > { %1708 = vmatprep.subr.bf16.mxu0 %v2106_v4 }
 0x59b   : > { %v1888_v38 = vpop.eup %1887 }
 0x59c   : > { %v1072_v39 = vmul.f32 %v1888_v38, %v1880_v19 }
 0x59e   : > { %v1073_v40 = vpack.c.bf16 %v1072_v39, %v1072_v39 }
 0x5a0   : > { %1697 = vmatmul.mubr.msk.bf16.vlgmr.msra.gmra.mxu0 %vm646_vm11, %v1073_v40 }
 0x5a1   : > { %1712 = vmatprep.mubr.msk.bf16.mxu0 %vm2107_vm1, %v2106_v4  ;;  %1709 = vmatpush3.bf16.msra.mxu0 %v1861_v13 }
 0x5a2   : > { %1710 = vmatprep.subr.bf16.mxu0 %v2106_v4 }
 0x629   : > { %v750_v41 = vpop.f32.mrf.mxu0 }
 0x62a   : > { %v756_v42 = vpack.c.bf16 %v750_v41, %v750_v41 }
 0x62b   : > { %v1662_v43 = vpop.f32.mrf.mxu0 }
 0x62c   : > { %757 = vst.msk [vmem:[#allocation4] sm:$0xf] %vm518_vm4, %v756_v42 }
 0x62d   : > { %v753_v44 = vpop.f32.mrf.mxu0 }
 0x62f   : > { %v1663_v45 = vpop.f32.mrf.mxu0 }
 0x631   : > { %v868_v46 = vpop.f32.mrf.mxu0 }
 0x632   : > { %v1606_v47 = vpack.c.bf16 %v868_v46, %v868_v46 }
 0x633   : > { %v1674_v48 = vpop.f32.mrf.mxu0 }
 0x634   : > { %878 = vrot.lane.b32.xlu1 %v1606_v47, %s2112_s30  ;;  %s2025_s30 = scalar_lea.vmem %s2512_s21, 128 }
 0x635   : > { %v871_v49 = vpop.f32.mrf.mxu0  ;;  %p2026_p4 = scmp.ne.s32.totalorder %s2512_s21, %s2025_s30 }
 0x637   : > { %v1675_v50 = vpop.f32.mrf.mxu0  ;;  %p2027_p5 = pnand %p2026_p4, %p2579_p7 }
 0x639   : > { %p2028_p6 = pneg %p2027_p5 }
 0x656   : > { %v992_v51 = vpop.f32.mrf.mxu0 }
 0x657   : > { %v1607_v53 = vpack.c.bf16 %v992_v51, %v992_v51 }
 0x658   : > { %v1686_v54 = vpop.f32.mrf.mxu0 }
 0x659   : > { %1002 = vrot.lane.b32.xlu0 %v1607_v53, %s2115_s11  ;;  %s2127_s11 = smov [#allocation14]  }
 0x65a   : > { %v995_v56 = vpop.f32.mrf.mxu0 }
 0x65c   : > { %v1687_v57 = vpop.f32.mrf.mxu0 }
 0x660   : > { %v1116_v58 = vpop.f32.mrf.mxu0 }
 0x661   : > { %v1608_v59 = vpack.c.bf16 %v1116_v58, %v1116_v58 }
 0x662   : > { %v1698_v60 = vpop.f32.mrf.mxu0 }
 0x663   : > { %1126 = vrot.lane.b32.xlu1 %v1608_v59, %s2116_s22  ;;  %s2029_s22 = sshll.u32 %s2127_s11, 4  ;;  %s2030_s22 = int_to_ptr.vmem [resolvable:$false] %s2029_s22 }
 0x664   : > { %v1119_v61 = vpop.f32.mrf.mxu0  ;;  %s2031_s27 = scalar_lea.vmem %s2030_s22, 256  ;;  %p2032_p10 = scmp.lt.s32.totalorder %s2512_s21, %s2030_s22 }
 0x665   : > { %p2033_p8 = scmp.lt.s32.totalorder %s2031_s27, %s2025_s30 }
 0x666   : > { %v1699_v62 = vpop.f32.mrf.mxu0 }
 0x667   : > { %p2034_p11 = por %p2033_p8, %p2032_p10 }
 0x669   : > { %p2035_p0 = pnand %p2034_p11, %p2028_p6 }
 0x6a6   : > { %v879_v63 = vpop.permute.xlu1 %878 }
 0x6a7   : > { %881 = vst.msk [vmem:[#allocation4] sm:$0xf] %vm541_vm5, %v879_v63 }
 0x6cb   : > { %v1003_v1 = vpop.permute.xlu0 %1002 }
 0x6cc   : > { %1005 = vst.msk [vmem:[#allocation4] sm:$0xf] %vm563_vm6, %v1003_v1 }
 0x6d5   : > { %v1127_v2 = vpop.permute.xlu1 %1126 }
 0x6d6   : > { %1129 = vst.msk [vmem:[#allocation4] sm:$0xf] %vm585_vm7, %v1127_v2 }
 0x6dd   : > { %v1130_v3 = vld [vmem:[#allocation4] sm:$0xf] }
 0x6de   : > { %1705 = vmatmul.mubr.msk.bf16.vlgmr.msra.gmra.mxu1 %vm423_vm0, %v1130_v3 }
 0x6df   : > { %1720 = vmatprep.mubr.msk.bf16.mxu1 %vm2107_vm1, %v2106_v4  ;;  %1717 = vmatpush3.bf16.msra.mxu1 %v1862_v17 }
 0x6e0   : > { %1718 = vmatprep.subr.bf16.mxu1 %v2106_v4 }
 0x6e3   : > { %1719 = vmatpush3.bf16.msra.mxu1 %v1864_v18 }
 0x79e   : > { %v1184_v5 = vpop.f32.mrf.mxu1 }
 0x79f   : > { %v2462_v6 = vadd.f32 %v1184_v5, %v2311_v0  ;;  %v1863_v0 = vld [vmem:[%s2559_s7] sm:$0xff]  }
 0x7a0   : > { %v1706_v7 = vpop.f32.mrf.mxu1  ;;  %1711 = vmatpush3.bf16.msra.mxu0 %v1863_v0 }
 0x7a1   : > { %v1191_v8 = vmul.f32 %v2462_v6, %v2462_v6  ;;  %1724 = vmatprep.subr.bf16.mxu0 %v2106_v4 }
 0x7a2   : > { %v1187_v9 = vpop.f32.mrf.mxu1 }
 0x7a3   : > { %v1192_v10 = vsel %vm423_vm0, %v1191_v8, 0.0 }
 0x7a4   : > { %1193 = vadd.xlane.f32.xlu0 %v1192_v10  ;;  %v1707_v11 = vpop.f32.mrf.mxu1 }
 0x82d   : > { %v1194_v19 = vpop.xlane.xlu0 %1193 }
 0x82e   : > { %v1195_v20 = vmul.f32 0.03125, %v1194_v19 }
 0x830   : > { %v1196_v21 = vadd.f32 1e-05, %v1195_v20 }
 0x832   : > { %1889 = vrsqrt.f32 %v1196_v21 }
 0x83f   : > { %v1890_v22 = vpop.eup %1889 }
 0x840   : > { %v1198_v23 = vmul.f32 %v1890_v22, %v2462_v6 }
 0x842   : > { %v1206_v24 = vmul.f32 %v1587_v12, %v1198_v23 }
 0x844   : > { %v1207_v14 = vpack.c.bf16 %v1206_v24, %v1206_v24 }
 0x846   : > { %1713 = vmatmul.mubr.msk.bf16.vlgmr.msra.gmra.mxu0 %vm423_vm0, %v1207_v14  ;;  %1721 = vmatmul.mubr.msk.bf16.vlgmr.msra.gmra.mxu1 %vm423_vm0, %v1207_v14 }
 0x847   : > { %1736 = vmatprep.mubr.msk.bf16.mxu0 %vm2107_vm1, %v2106_v4  ;;  %1725 = vmatpush3.bf16.msra.mxu0 %v1865_v25 }
 0x848   : > { %1726 = vmatprep.subr.bf16.mxu0 %v2106_v4 }
 0x84b   : > { %1727 = vmatpush3.bf16.msra.mxu0 %v1866_v26 }
 0x84c   : > { %1728 = vmatprep.subr.bf16.mxu0 %v2106_v4 }
 0x84f   : > { %1729 = vmatpush3.bf16.msra.mxu0 %v1867_v16 }
 0x850   : > { %1730 = vmatprep.subr.bf16.mxu0 %v2106_v4 }
 0x853   : > { %1731 = vmatpush3.bf16.msra.mxu0 %v1868_v27 }
 0x854   : > { %1732 = vmatprep.subr.bf16.mxu0 %v2106_v4 }
 0x857   : > { %1733 = vmatpush3.bf16.msra.mxu0 %v1869_v28 }
 0x858   : > { %1734 = vmatprep.subr.bf16.mxu0 %v2106_v4 }
 0x85b   : > { %1735 = vmatpush3.bf16.msra.mxu0 %v1870_v15 }
 0x906   : > { %v1261_v29 = vpop.f32.mrf.mxu0  ;;  %v1317_v30 = vpop.f32.mrf.mxu1 }
 0x907   : > { %v1594_v31 = vmul.f32 -1.442695, %v1261_v29 }
 0x908   : > { %v1714_v32 = vpop.f32.mrf.mxu0  ;;  %v1722_v33 = vpop.f32.mrf.mxu1 }
 0x909   : > { %1891 = vpow2.f32 %v1594_v31 }
 0x90a   : > { %v1264_v34 = vpop.f32.mrf.mxu0  ;;  %v1320_v35 = vpop.f32.mrf.mxu1 }
 0x90c   : > { %v1715_v36 = vpop.f32.mrf.mxu0  ;;  %v1723_v37 = vpop.f32.mrf.mxu1 }
 0x916   : > { %v1892_v38 = vpop.eup %1891 }
 0x917   : > { %v1326_v39 = vadd.f32 1.0, %v1892_v38 }
 0x919   : > { %1893 = vrcp.f32 %v1326_v39 }
 0x926   : > { %v1894_v4 = vpop.eup %1893 }
 0x927   : > { %v1329_v40 = vmul.f32 %v1894_v4, %v1261_v29 }
 0x929   : > { %v1330_v41 = vmul.f32 %v1329_v40, %v1317_v30 }
 0x92b   : > { %v1331_v42 = vpack.c.bf16 %v1330_v41, %v1330_v41 }
 0x92d   : > { %1737 = vmatmul.mubr.msk.bf16.vlgmr.msra.gmra.mxu0 %vm1380_vm14, %v1331_v42 }
 0x9ed   : > { %v1418_v43 = vpop.f32.mrf.mxu0 }
 0x9ee   : > { %v1424_v44 = vadd.f32 %v1418_v43, %v2462_v6 }
 0x9ef   : > { %v1738_v45 = vpop.f32.mrf.mxu0 }
 0x9f0   : > { %1425 = vst.msk [vmem:[%s415_s12] sm:$0xff] %vm423_vm0, %v1424_v44 }
 0x9f1   : > { %v1421_v46 = vpop.f32.mrf.mxu0 }
 0x9f2   : > { %2038 = shalt.err (!%p2035_p0)
}
 0x9f3   : > { %s2039_s18 = scalar_lea.hbm %s2510_s20, 128  ;;  %s2043_s12 = scalar_lea.hbm %s2562_s10, 256 }
 0x9f4   : > { %p2040_p13 = scmp.ne.s32.totalorder %s2510_s20, %s2039_s18  ;;  %p2044_p9 = scmp.lt.s32.totalorder %s2510_s20, %s2562_s10 }
 0x9f5   : > { %p2045_p12 = scmp.lt.s32.totalorder %s2043_s12, %s2039_s18 }
 0x9f6   : > { %p2041_p1 = pnand %p2040_p13, %p2579_p7 }
 0x9f7   : > { %p2046_p3 = por %p2045_p12, %p2044_p9 }
 0x9f8   : > { %p2042_p2 = pneg %p2041_p1 }
 0x9fa   : > { %p2047_p4 = pnand %p2046_p3, %p2042_p2 }
 0x9fc   : > { %2050 = shalt.err (!%p2047_p4)
}
 0x9fd   : > { %1760 = dma.vmem_to_hbm [thread:$0]  (%p2579_p7), %s2512_s21, 128, %s2510_s20, %s1427_s17   ;;  %v1739_v47 = vpop.f32.mrf.mxu0 }
 0x9fe PF: > { %p1792_p5 = scmp.ge.s32.totalorder %s2097_s16, 2  ;;  %s1452_s30 = sand.u32 1, %s2085_s13  }
 0x9ff   : > { %p2580_p6 = scmp.ne.s32.totalorder %s2568_s24, 0  ;;  %s1453_s11 = scalar_lea.sflag [#allocation7], %s1452_s30 }
 0xa01   : > { %p1779_p10 = pnand %p1792_p5, %p2580_p6 }
 0xa03   : > { %p1780_p8 = pneg %p1779_p10 }
 0xa05   : > { %2080 = dma.done.wait (%p1780_p8), %s1453_s11, 128  }
 0xa06   : > { %2082 = vsyncadd (%p1780_p8), %s1453_s11, 4294967168  ;;  %s2581_s23 = sld [smem:[#allocation19_spill]]  ;;  %p23_p11 = scmp.ge.s32.totalorder %s2208_s19, 4  }
 0xa07   : > { %s2582_s13 = smov %s2089_s14  ;;  %s2583_s14 = smov %s2093_s15 }
 0xa08   : > { %s2585_s16 = smov %s2208_s19  ;;  %25 = sbr.rel (!%p23_p11) target bundleno = 6 (0x6), region = 116 }
 0xa0c   : > { %s2584_s15 = smov %s2581_s23 }
 0xa0d   :  { %1458 = vsyncpa [#allocation6], 1 }
 0xa0e   :  { %1460 = vsyncpa [#allocation6 + $0x1], 1 }
 0xa0f   :  { %1461 = vsyncpa [#allocation9], 1 }
 0xa10   :  { %1462 = vsyncpa [#allocation12], 1 }
 0xa11   :  { %1463 = vsyncpa [#allocation7], 1 }
 0xa12   :  { %1465 = vsyncpa [#allocation7 + $0x1], 1 }

</bundles_post_ra>
